<compile_context>
chip_gen: v5e
topology: v5e:2x2
jax: 0.10.0
libtpu: 0.0.40
codegen_flags: <defaults>
</compile_context>

<pallas_src>
import jax
import jax.numpy as jnp
from jax import lax
from jax.experimental import pallas as pl
from jax.experimental.pallas import tpu as pltpu


def _self_attention_kernel(x_ref, wq_ref, bq_ref, wvk_ref, bvk_ref, gamma_ref,
                           o_ref, vk_ref):
    c = o_ref.shape[1]          # C (in_dim), static at trace time
    tq = o_ref.shape[2]         # query-block width
    cq = wq_ref.shape[0]        # C // 8
    n = x_ref.shape[2]          # N = W * H
    qi = pl.program_id(1)

    # Fused value/key projection, computed ONCE per batch (hoisted out of the
    # query-block loop) and persisted across qi steps in a bf16 VMEM scratch.
    @pl.when(qi == 0)
    def _():
        x_bf = x_ref[0].astype(jnp.bfloat16)                           # (C, N)
        vk = jnp.dot(wvk_ref[...], x_bf,
                     preferred_element_type=jnp.float32) + bvk_ref[...]
        vk_ref[...] = vk.astype(jnp.bfloat16)                          # (C+Cq, N)

    # Query block = lane slice of the resident full image (no second x fetch;
    # the slice offset is a multiple of 128 so it is free in VMEM).
    if tq == n:
        xq = x_ref[0]                                                  # (C, N) f32
    else:
        off = pl.multiple_of(qi * tq, 128)
        xq = x_ref[0, :, pl.ds(off, tq)]                               # (C, TQ) f32

    # Query projection only for this block; bf16 operands, f32 accumulation.
    q = jnp.dot(wq_ref[...], xq.astype(jnp.bfloat16),
                preferred_element_type=jnp.float32) + bq_ref[...]      # (Cq, TQ)

    v = vk_ref[0:c]                                                    # (C,  N) bf16
    k = vk_ref[c:c + cq]                                               # (Cq, N) bf16

    # energy[i, j] = sum_c q[c, i] * k[c, j] -> (TQ, N); TN contraction on the
    # MXU with bf16 operands, no transposed copies materialized.
    energy = lax.dot_general(q.astype(jnp.bfloat16), k,
                             (((0,), (0,)), ((), ())),
                             preferred_element_type=jnp.float32)

    # Numerically-stable softmax over keys in f32 (matches nn.Softmax(dim=-1)).
    energy = energy - jnp.max(energy, axis=-1, keepdims=True)
    p = jnp.exp(energy)
    attn = p * pl.reciprocal(jnp.sum(p, axis=-1, keepdims=True), approx=True)

    # out[c, i] = sum_j v[c, j] * attn[i, j] -> (C, TQ); NT contraction,
    # bf16 operands (halves the biggest VMEM intermediate), f32 accumulation.
    out = lax.dot_general(v, attn.astype(jnp.bfloat16),
                          (((1,), (1,)), ((), ())),
                          preferred_element_type=jnp.float32)

    o_ref[0] = gamma_ref[0] * out + xq


def _estimate_vmem_bytes(C, Cq, N, tq):
    """Rough per-step VMEM footprint: resident x, [v;k] scratch, softmax temps."""
    f32, bf16 = 4, 2
    b = 2 * C * N * f32                        # double-buffered resident x block
    b += (C + Cq) * N * bf16                   # persistent [v; k] scratch
    b += 2 * C * tq * f32                      # double-buffered output block
    b += tq * N * (2 * f32 + bf16)             # energy + p (f32), attn (bf16)
    b += Cq * N * bf16 + 2 * Cq * tq * f32     # k view + q temporaries
    b += (C + 2 * Cq) * (C * bf16 + f32)       # weights + biases
    return b


def _vmem_capacity_bytes():
    try:
        return int(pltpu.get_tpu_info().vmem_capacity_bytes)
    except Exception:
        return 64 * 1024 * 1024                # conservative: v7x per-core VMEM


def _pick_tq(N, C, Cq, budget):
    """Largest lane-aligned query tile dividing N that fits the VMEM budget.

    Prefers 512/256 (full MXU output width on v6e/v7x); 128 only as a fallback
    (still fine on v5e's 128-wide MXU).
    """
    cands = [t for t in (512, 256, 128) if N % t == 0]
    if not cands:
        # TODO(synk): N not a multiple of 128 -> single full-width block; the
        # (N, N) softmax intermediate may not fit VMEM for large images.
        return N
    for t in cands:
        if _estimate_vmem_bytes(C, Cq, N, t) <= budget:
            return t
    return cands[-1]


def self_attention(x_nchw, wq, bq, wk, bk, wv, bv, gamma, *, tq=None):
    """SAGAN self-attention forward. x_nchw: (B, C, W, H) f32 -> (B, C, W, H) f32."""
    B, C, W, H = x_nchw.shape
    N = W * H
    Cq = wq.shape[0]
    assert Cq >= 1 and C % 8 == 0, "in_dim must be >= 8 and a multiple of 8"

    vmem_cap = _vmem_capacity_bytes()
    if tq is None:
        tq = _pick_tq(N, C, Cq, budget=int(0.55 * vmem_cap))
    assert N % tq == 0 and (tq == N or tq % 128 == 0), \
        "tq must divide N and be a multiple of 128 (or equal N)"
    n_q = N // tq

    # Channel-major flatten: (B, C, W, H) -> (B, C, N) is a free reshape
    # (same flattening order as torch .view(B, -1, W*H)).
    x_cn = x_nchw.reshape(B, C, N)

    # Pre-packed bf16 MXU operands (value rows first => sublane-aligned split);
    # biases stay f32 and are added to the f32 MXU accumulators.
    w_vk = jnp.concatenate([wv, wk], axis=0).astype(jnp.bfloat16)      # (C+Cq, C)
    b_vk = jnp.concatenate([bv, bk], axis=0).reshape(C + Cq, 1).astype(jnp.float32)
    wq_b = wq.astype(jnp.bfloat16)                                     # (Cq, C)
    bq2 = bq.reshape(Cq, 1).astype(jnp.float32)
    gamma1 = gamma.reshape(1).astype(jnp.float32)

    est = _estimate_vmem_bytes(C, Cq, N, tq)
    vmem_limit = int(max(32 * 1024 * 1024,
                         min(int(1.5 * est) + (4 << 20), vmem_cap - (8 << 20))))

    flops = 2 * B * (N * C * (C + 2 * Cq) + N * N * Cq + N * N * C)
    bytes_accessed = (8 * B * C * N                      # read x + write y (f32)
                      + 2 * (C + 2 * Cq) * C             # bf16 weights
                      + 4 * (C + 2 * Cq + 1))            # f32 biases + gamma
    cost = pl.CostEstimate(flops=flops, transcendentals=B * N * N,
                           bytes_accessed=bytes_accessed)

    out_cn = pl.pallas_call(
        _self_attention_kernel,
        out_shape=jax.ShapeDtypeStruct((B, C, N), jnp.float32),
        grid_spec=pltpu.PrefetchScalarGridSpec(
            num_scalar_prefetch=0,
            grid=(B, n_q),
            in_specs=[
                # Full image; index_map ignores qi so it is fetched once per batch.
                pl.BlockSpec((1, C, N), lambda b, qi: (b, 0, 0)),
                pl.BlockSpec((Cq, C), lambda b, qi: (0, 0)),           # Wq (bf16)
                pl.BlockSpec((Cq, 1), lambda b, qi: (0, 0)),           # bq
                pl.BlockSpec((C + Cq, C), lambda b, qi: (0, 0)),       # [Wv; Wk] (bf16)
                pl.BlockSpec((C + Cq, 1), lambda b, qi: (0, 0)),       # [bv; bk]
                pl.BlockSpec(memory_space=pltpu.SMEM),                 # gamma scalar
            ],
            out_specs=pl.BlockSpec((1, C, tq), lambda b, qi: (b, 0, qi)),
            scratch_shapes=[pltpu.VMEM((C + Cq, N), jnp.bfloat16)],    # persistent [v;k]
        ),
        compiler_params=pltpu.CompilerParams(
            # qi must be "arbitrary": the vk scratch is initialized under
            # @pl.when(qi == 0); a megacore split of qi would break that.
            # Batch axis stays "parallel" so both v7x TensorCores get work.
            dimension_semantics=("parallel", "arbitrary"),
            vmem_limit_bytes=vmem_limit),
        cost_estimate=cost,
    )(x_cn, wq_b, bq2, w_vk, b_vk, gamma1)

    return out_cn.reshape(B, C, W, H)


def _reference(x_nchw, wq, bq, wk, bk, wv, bv, gamma):
    """Pure-JAX (f32) reference mirroring the PyTorch forward exactly."""
    B, C, W, H = x_nchw.shape
    N = W * H
    x_cn = x_nchw.reshape(B, C, N)                                    # (B, C, N)
    q = jnp.einsum('oc,bcn->bon', wq, x_cn) + bq[None, :, None]       # (B, Cq, N)
    k = jnp.einsum('oc,bcn->bon', wk, x_cn) + bk[None, :, None]
    v = jnp.einsum('oc,bcn->bon', wv, x_cn) + bv[None, :, None]       # (B, C, N)
    energy = jnp.einsum('bci,bcj->bij', q, k)                         # (B, N, N)
    attn = jax.nn.softmax(energy, axis=-1)
    out = jnp.einsum('bcj,bij->bci', v, attn)                         # (B, C, N)
    return (gamma.reshape(()) * out + x_cn).reshape(B, C, W, H)


if __name__ == "__main__":
    key = jax.random.PRNGKey(0)
    B, C, W, H = 2, 32, 16, 16          # N = 256
    Cq = C // 8

    k0, k1, k2, k3, k4, k5, k6 = jax.random.split(key, 7)
    x = jax.random.normal(k0, (B, C, W, H), dtype=jnp.float32)

    # Conv2d(kernel_size=1) weights stored as (out_channels, in_channels).
    wq = 0.1 * jax.random.normal(k1, (Cq, C), dtype=jnp.float32)
    bq = 0.1 * jax.random.normal(k2, (Cq,), dtype=jnp.float32)
    wk = 0.1 * jax.random.normal(k3, (Cq, C), dtype=jnp.float32)
    bk = 0.1 * jax.random.normal(k4, (Cq,), dtype=jnp.float32)
    wv = 0.1 * jax.random.normal(k5, (C, C), dtype=jnp.float32)
    bv = 0.1 * jax.random.normal(k6, (C,), dtype=jnp.float32)
    # PyTorch inits gamma to 0 (output == x); use a nonzero deterministic value
    # so the attention path is actually exercised.
    gamma = jnp.array([0.5], dtype=jnp.float32)

    # Auto-picked tile (single query block at N=256) ...
    y = self_attention(x, wq, bq, wk, bk, wv, bv, gamma)
    y = jax.block_until_ready(y)
    # ... and an explicit tq=128 run to exercise the multi-block / persistent
    # scratch path (two qi steps per batch).
    y2 = self_attention(x, wq, bq, wk, bk, wv, bv, gamma, tq=128)
    y2 = jax.block_until_ready(y2)

    y_ref = _reference(x, wq, bq, wk, bk, wv, bv, gamma)
    assert y.shape == (B, C, W, H)
    # Tolerance accounts for bf16 MXU operands + the approximate EUP reciprocal
    # in the softmax denominator (f32 accumulation / softmax arithmetic kept).
    assert jnp.allclose(y, y_ref, atol=2e-2, rtol=2e-2), "mismatch vs reference"
    assert jnp.allclose(y2, y_ref, atol=2e-2, rtol=2e-2), "mismatch vs reference (tq=128)"

    print("KERNEL_OK")
</pallas_src>

<mosaic_0001>
module attributes {stable_mosaic.version = 11 : i64} {
  func.func @_self_attention_kernel(%arg0: i32, %arg1: i32, %arg2: memref<1x32x256xf32, #tpu.memory_space<vmem>>, %arg3: memref<4x32xbf16, #tpu.memory_space<vmem>>, %arg4: memref<4x1xf32, #tpu.memory_space<vmem>>, %arg5: memref<36x32xbf16, #tpu.memory_space<vmem>>, %arg6: memref<36x1xf32, #tpu.memory_space<vmem>>, %arg7: memref<1xf32, #tpu.memory_space<smem>>, %arg8: memref<1x32x256xf32, #tpu.memory_space<vmem>>, %arg9: memref<36x256xbf16, #tpu.memory_space<vmem>>) attributes {dimension_semantics = [#tpu.dimension_semantics<parallel>, #tpu.dimension_semantics<arbitrary>], iteration_bounds = array<i64: 2, 1>, scalar_prefetch = 0 : i64, scratch_operands = 1 : i64, tpu.core_type = #tpu.core_type<tc>, window_params = [{transform_indices = @transform_0, window_bounds = array<i64: 1, 32, 256>}, {pipeline_mode = #tpu.pipeline_mode<synchronous>, transform_indices = @transform_1, window_bounds = array<i64: 4, 32>}, {pipeline_mode = #tpu.pipeline_mode<synchronous>, transform_indices = @transform_2, window_bounds = array<i64: 4, 1>}, {pipeline_mode = #tpu.pipeline_mode<synchronous>, transform_indices = @transform_3, window_bounds = array<i64: 36, 32>}, {pipeline_mode = #tpu.pipeline_mode<synchronous>, transform_indices = @transform_4, window_bounds = array<i64: 36, 1>}, {transform_indices = @transform_5, window_bounds = array<i64: 1>}, {transform_indices = @transform_6, window_bounds = array<i64: 1, 32, 256>}]} {
    %c0_i32 = arith.constant 0 : i32
    %0 = arith.cmpi eq, %arg1, %c0_i32 : i32
    %1 = arith.extui %0 : i1 to i32
    %c0_i32_0 = arith.constant 0 : i32
    %2 = arith.cmpi ne, %1, %c0_i32_0 : i32
    scf.if %2 {
      %c0_18 = arith.constant 0 : index
      %c0_19 = arith.constant 0 : index
      %c0_20 = arith.constant 0 : index
      %34 = vector.load %arg2[%c0_18, %c0_19, %c0_20] : memref<1x32x256xf32, #tpu.memory_space<vmem>>, vector<1x32x256xf32>
      %35 = vector.shape_cast %34 : vector<1x32x256xf32> to vector<32x256xf32>
      %36 = arith.truncf %35 : vector<32x256xf32> to vector<32x256xbf16>
      %c0_21 = arith.constant 0 : index
      %c0_22 = arith.constant 0 : index
      %37 = vector.load %arg5[%c0_21, %c0_22] : memref<36x32xbf16, #tpu.memory_space<vmem>>, vector<36x32xbf16>
      %cst_23 = arith.constant dense<0.000000e+00> : vector<36x256xf32>
      %38 = tpu.matmul %37, %36, %cst_23 {dimension_numbers = #tpu.dot_dimension_numbers<[1], [0], [0], [1], [0, 0, 1, 1], [], []>} : vector<36x32xbf16>, vector<32x256xbf16>, vector<36x256xf32> -> vector<36x256xf32>
      %c0_24 = arith.constant 0 : index
      %c0_25 = arith.constant 0 : index
      %39 = vector.load %arg6[%c0_24, %c0_25] : memref<36x1xf32, #tpu.memory_space<vmem>>, vector<36x1xf32>
      %40 = vector.broadcast %39 : vector<36x1xf32> to vector<36x256xf32>
      %41 = arith.addf %38, %40 : vector<36x256xf32>
      %42 = arith.truncf %41 : vector<36x256xf32> to vector<36x256xbf16>
      %c0_26 = arith.constant 0 : index
      %c0_27 = arith.constant 0 : index
      %43 = vector.load %arg9[%c0_26, %c0_27] : memref<36x256xbf16, #tpu.memory_space<vmem>>, vector<36x256xbf16>
      tpu.vector_store %arg9[%c0_26, %c0_27], %42 {strides = array<i32>} : memref<36x256xbf16, #tpu.memory_space<vmem>>, vector<36x256xbf16>,
    } else {
    }
    %c0 = arith.constant 0 : index
    %c0_1 = arith.constant 0 : index
    %c0_2 = arith.constant 0 : index
    %3 = vector.load %arg2[%c0, %c0_1, %c0_2] : memref<1x32x256xf32, #tpu.memory_space<vmem>>, vector<1x32x256xf32>
    %4 = vector.shape_cast %3 : vector<1x32x256xf32> to vector<32x256xf32>
    %c0_3 = arith.constant 0 : index
    %c0_4 = arith.constant 0 : index
    %5 = vector.load %arg3[%c0_3, %c0_4] : memref<4x32xbf16, #tpu.memory_space<vmem>>, vector<4x32xbf16>
    %6 = arith.truncf %4 : vector<32x256xf32> to vector<32x256xbf16>
    %cst = arith.constant dense<0.000000e+00> : vector<4x256xf32>
    %7 = tpu.matmul %5, %6, %cst {dimension_numbers = #tpu.dot_dimension_numbers<[1], [0], [0], [1], [0, 0, 1, 1], [], []>} : vector<4x32xbf16>, vector<32x256xbf16>, vector<4x256xf32> -> vector<4x256xf32>
    %c0_5 = arith.constant 0 : index
    %c0_6 = arith.constant 0 : index
    %8 = vector.load %arg4[%c0_5, %c0_6] : memref<4x1xf32, #tpu.memory_space<vmem>>, vector<4x1xf32>
    %9 = vector.broadcast %8 : vector<4x1xf32> to vector<4x256xf32>
    %10 = arith.addf %7, %9 : vector<4x256xf32>
    %c0_7 = arith.constant 0 : index
    %c0_8 = arith.constant 0 : index
    %11 = vector.load %arg9[%c0_7, %c0_8] : memref<36x256xbf16, #tpu.memory_space<vmem>>, vector<32x256xbf16>
    %c32 = arith.constant 32 : index
    %c0_9 = arith.constant 0 : index
    %12 = vector.load %arg9[%c32, %c0_9] : memref<36x256xbf16, #tpu.memory_space<vmem>>, vector<4x256xbf16>
    %13 = arith.truncf %10 : vector<4x256xf32> to vector<4x256xbf16>
    %cst_10 = arith.constant dense<0.000000e+00> : vector<256x256xf32>
    %14 = tpu.matmul %13, %12, %cst_10 {dimension_numbers = #tpu.dot_dimension_numbers<[0], [0], [1], [1], [0, 1, 1, 1], [], []>} : vector<4x256xbf16>, vector<4x256xbf16>, vector<256x256xf32> -> vector<256x256xf32>
    %cst_11 = arith.constant dense<0xFF800000> : vector<256xf32>
    %15 = vector.multi_reduction <maximumf>, %14, %cst_11 [1] : vector<256x256xf32> to vector<256xf32>
    %16 = vector.shape_cast %15 : vector<256xf32> to vector<256x1xf32>
    %17 = vector.broadcast %16 : vector<256x1xf32> to vector<256x256xf32>
    %18 = arith.subf %14, %17 : vector<256x256xf32>
    %19 = math.exp %18 : vector<256x256xf32>
    %cst_12 = arith.constant dense<0.000000e+00> : vector<256xf32>
    %20 = vector.multi_reduction <add>, %19, %cst_12 [1] : vector<256x256xf32> to vector<256xf32>
    %21 = vector.shape_cast %20 : vector<256xf32> to vector<256x1xf32>
    %22 = tpu.reciprocal %21 {approx = true} : vector<256x1xf32> -> vector<256x1xf32>
    %23 = vector.broadcast %22 : vector<256x1xf32> to vector<256x256xf32>
    %24 = arith.mulf %19, %23 : vector<256x256xf32>
    %25 = arith.truncf %24 : vector<256x256xf32> to vector<256x256xbf16>
    %cst_13 = arith.constant dense<0.000000e+00> : vector<32x256xf32>
    %26 = tpu.matmul %11, %25, %cst_13 {dimension_numbers = #tpu.dot_dimension_numbers<[1], [1], [0], [0], [0, 0, 1, 0], [], []>} : vector<32x256xbf16>, vector<256x256xbf16>, vector<32x256xf32> -> vector<32x256xf32>
    %c0_14 = arith.constant 0 : index
    %27 = memref.load %arg7[%c0_14] : memref<1xf32, #tpu.memory_space<smem>>
    %28 = vector.broadcast %27 : f32 to vector<32x256xf32>
    %29 = arith.mulf %28, %26 : vector<32x256xf32>
    %30 = arith.addf %29, %4 : vector<32x256xf32>
    %c0_15 = arith.constant 0 : index
    %c0_16 = arith.constant 0 : index
    %c0_17 = arith.constant 0 : index
    %31 = vector.load %arg8[%c0_15, %c0_16, %c0_17] : memref<1x32x256xf32, #tpu.memory_space<vmem>>, vector<1x32x256xf32>
    %32 = vector.shape_cast %31 : vector<1x32x256xf32> to vector<32x256xf32>
    %33 = vector.shape_cast %30 : vector<32x256xf32> to vector<1x32x256xf32>
    tpu.vector_store %arg8[%c0_15, %c0_16, %c0_17], %33 {strides = array<i32>} : memref<1x32x256xf32, #tpu.memory_space<vmem>>, vector<1x32x256xf32>,
    return
  }
  func.func @transform_0(%arg0: i32, %arg1: i32) -> (i32, i32, i32) {
    %c0_i32 = arith.constant 0 : i32
    %c0_i32_0 = arith.constant 0 : i32
    %c0_i32_1 = arith.constant 0 : i32
    return %arg0, %c0_i32, %c0_i32_0 : i32, i32, i32
  }
  func.func @transform_1(%arg0: i32, %arg1: i32) -> (i32, i32) {
    %c0_i32 = arith.constant 0 : i32
    %c0_i32_0 = arith.constant 0 : i32
    %c0_i32_1 = arith.constant 0 : i32
    return %c0_i32, %c0_i32_0 : i32, i32
  }
  func.func @transform_2(%arg0: i32, %arg1: i32) -> (i32, i32) {
    %c0_i32 = arith.constant 0 : i32
    %c0_i32_0 = arith.constant 0 : i32
    %c0_i32_1 = arith.constant 0 : i32
    return %c0_i32, %c0_i32_0 : i32, i32
  }
  func.func @transform_3(%arg0: i32, %arg1: i32) -> (i32, i32) {
    %c0_i32 = arith.constant 0 : i32
    %c0_i32_0 = arith.constant 0 : i32
    %c0_i32_1 = arith.constant 0 : i32
    return %c0_i32, %c0_i32_0 : i32, i32
  }
  func.func @transform_4(%arg0: i32, %arg1: i32) -> (i32, i32) {
    %c0_i32 = arith.constant 0 : i32
    %c0_i32_0 = arith.constant 0 : i32
    %c0_i32_1 = arith.constant 0 : i32
    return %c0_i32, %c0_i32_0 : i32, i32
  }
  func.func @transform_5(%arg0: i32, %arg1: i32) -> i32 {
    %c0_i32 = arith.constant 0 : i32
    %c0_i32_0 = arith.constant 0 : i32
    return %c0_i32 : i32
  }
  func.func @transform_6(%arg0: i32, %arg1: i32) -> (i32, i32, i32) {
    %c0_i32 = arith.constant 0 : i32
    %c0_i32_0 = arith.constant 0 : i32
    return %arg0, %c0_i32, %arg1 : i32, i32, i32
  }
}

</mosaic_0001>

<bundles_post_ra>
// kernel: tpu_custom_call.1
= control target key start
LH: loop header
LB: loop body
LE: loop exit
PB: predicated region body
PF: predicated region fallthrough
CT: control target
= control target key end

     0   :  { %s2939_s0 = inlined_call_operand.hbm [shape: f32[2,32,256], index: 0, kind: input, shape index: {}]   ;;  %s2940_s1 = inlined_call_operand.vmem [shape: bf16[4,32], index: 1, kind: input, shape index: {}]   ;;  %s2941_s2 = inlined_call_operand.vmem [shape: f32[4,1], index: 2, kind: input, shape index: {}]   ;;  %s2942_s3 = inlined_call_operand.vmem [shape: bf16[36,32], index: 3, kind: input, shape index: {}]   ;;  %s2943_s4 = inlined_call_operand.vmem [shape: f32[36,1], index: 4, kind: input, shape index: {}]   ;;  %s2944_s5 = inlined_call_operand.<no memory space> [shape: f32[1], index: 5, kind: input, shape index: {}]   ;;  %s2945_s6 = inlined_call_operand.hbm [shape: f32[2,32,256], index: 6, kind: output, shape index: {}]  }
   0x1   :  { %11 = sst [smem:[#allocation3]] %s2944_s5 }
   0x2   :  { %12 = vsyncpa [#allocation5], 0 }
   0x3   :  { %14 = vsyncpa [#allocation5 + $0x1], 0 }
   0x4   :  { %15 = vsyncpa [#allocation6], 0 }
   0x5   :  { %17 = vsyncpa [#allocation6 + $0x1], 0  ;;  %s1988_s23 = smov 0   ;;  %s1990_s24 = smov 0  }
   0x6   :  { %s1992_s25 = smov 0   ;;  %s1994_s26 = smov 0  }
   0x7   :  { %s1996_s27 = smov 0   ;;  %s1998_s28 = smov 0  }
   0x8 LB: > { %s1474_s5 = sadd.s32 4294967295, %s1943_s28   ;;  %s1475_s29 = sadd.s32 4294967294, %s1943_s28   ;;  %s1943_s28 = sphi %s1998_s28, %s23_s28   ;;  %s1939_s27 = sphi %s1996_s27, %s3055_s27   ;;  %s1935_s26 = sphi %s1994_s26, %s3054_s26   ;;  %s1931_s25 = sphi %s1992_s25, %s3053_s25   ;;  %s1927_s24 = sphi %s1990_s24, %s3052_s24   ;;  %s1923_s23 = sphi %s1988_s23, %s3051_s23  }
   0x9   : > { %s35_s30 = sadd.s32 1, %s1939_s27  ;;  %s42_s7 = sadd.s32 1, %s1931_s25 }
   0xa   : > { %p37_p0 = scmp.ge.s32.totalorder %s35_s30, 2  ;;  %p49_p1 = scmp.ne.s32.totalorder %s1931_s25, %s1927_s24 }
   0xb   : > { %p50_p2 = scmp.eq.s32.totalorder %s1943_s28, 0  ;;  %p55_p3 = scmp.ne.s32.totalorder %s1927_s24, %s1923_s23 }
   0xc   : > { %s3057_s30 = smov (%p37_p0, %s35_s30), 0  ;;  %p56_p5 = scmp.eq.s32.totalorder %s1474_s5, 0 }
   0xd   : > { %p2029_p4 = por %p50_p2, %p49_p1  ;;  %s39_s9 = ssub.s32 %s1939_s27, %s3057_s30 }
   0xe   : > { %p186_p6 = scmp.eq.s32.totalorder %s1474_s5, 1  ;;  %p40_p7 = scmp.eq.s32.totalorder %s39_s9, 0 }
   0xf   : > { %p2035_p8 = por %p56_p5, %p55_p3  ;;  %p192_p10 = scmp.eq.s32.totalorder %s1475_s29, 1 }
  0x10   : > { %p2039_p9 = por %p186_p6, %p49_p1  ;;  %p1477_p12 = scmp.ge.s32.totalorder %s1943_s28, 2 }
  0x11   : > { %s2044_s12 = scalar_select %p40_p7, %s1931_s25, %s42_s7  }
  0x12   : > { %p2046_p11 = por %p192_p10, %p55_p3  ;;  %p1573_p13 = scmp.lt.s32.totalorder %s1943_s28, 2 }
  0x13   : > { %s227_s14 = sand.u32 1, %s1931_s25   ;;  %s1553_s16 = sshll.u32 %s1939_s27, 6 }
  0x14   : > { %s1478_s15 = sshll.u32 %s227_s14, 6  ;;  %s236_s19 = scalar_lea.hbm %s2939_s0, %s1553_s16 }
  0x15   : > { %s231_s20 = scalar_lea.vmem [#allocation4], %s1478_s15  ;;  %s237_s22 = sshll.u32 %s236_s19, 4  ;;  %s238_s22 = int_to_ptr.hbm [resolvable:$true] %s237_s22 }
  0x16   : > { %s239_s21 = sshll.u32 %s231_s20, 4  ;;  %p1566_p0 = pnand %p1573_p13, %p2029_p4  ;;  %s240_s21 = int_to_ptr.vmem [resolvable:$true] %s239_s21 }
  0x17   : > { %p1481_p1 = scmp.ge.s32.totalorder %s1943_s28, 1  ;;  %s228_s5 = scalar_lea.sflag [#allocation5], %s227_s14 }
  0x18   : > { %s1945_s29 = smov 256   ;;  %s1946_s7 = smov 16  }
  0x19   : > { %1568 = dma.hbm_to_vmem [thread:$0]  (!%p1566_p0), %s238_s22, 1024, %s240_s21, %s228_s5, %s1945_s29, %s1945_s29, %s1946_s7  }
  0x1a   : > { %p247_p2 = scmp.lt.s32.totalorder %s1943_s28, 3 }
  0x1c   : > { %p248_p3 = pnand %p1481_p1, %p247_p2 }
  0x1e   : > { %251 = sbr.rel (%p248_p3) target bundleno = 1426 (0x592), region = 44 }
  0x23   : > { %s2062_s9 = sand.u32 1, %s1927_s24  }
  0x24   : > { %s1482_s15 = sshll.u32 %s2062_s9, 6  ;;  %s254_s16 = scalar_lea.sflag [#allocation5], %s2062_s9 }
  0x25   : > { %s2068_s8 = scalar_lea.vmem [#allocation4], %s1482_s15 }
  0x26   : > { %1914 = dma.done.wait (%p2035_p8), %s254_s16, 1024  }
  0x27   : > { %1916 = vsyncadd (%p2035_p8), %s254_s16, 4294966272  ;;  %v297_v0 = vld [vmem:[%s2068_s8 + $0x20] sm:$0xff]  ;;  %v299_v1 = vld [vmem:[%s2068_s8 + $0x30] sm:$0xff]  ;;  %vm353_vm0 = vcmask 261120   ;;  %v1947_v14 = vmov 0   ;;  %vm553_vm1 = vcmask 1041408  }
  0x28   : > { %v298_v2 = vld [vmem:[%s2068_s8 + $0x28] sm:$0xff]  ;;  %v303_v3 = vpack.c.bf16 %v299_v1, %v297_v0  ;;  %v300_v4 = vld [vmem:[%s2068_s8 + $0x38] sm:$0xff]  ;;  %v293_v5 = vld [vmem:[%s2068_s8] sm:$0xff]  ;;  %1628 = vset.pattern.permute.xlu0 %v1947_v14  ;;  %1629 = vset.pattern.permute.xlu2 %v1947_v14  ;;  %vm504_vm2 = vcmask 31744   ;;  %s1346_s5 = sld [smem:[#allocation3]]  ;;  %s2883_s29 = scalar_lea.vmem [#allocation7], %s1482_s15 }
  0x29   : > { %v295_v6 = vld [vmem:[%s2068_s8 + $0x10] sm:$0xff]  ;;  %v304_v7 = vpack.c.bf16 %v300_v4, %v298_v2  ;;  %v294_v8 = vld [vmem:[%s2068_s8 + $0x8] sm:$0xff]  ;;  %v296_v9 = vld [vmem:[%s2068_s8 + $0x18] sm:$0xff]  ;;  %s1560_s15 = sshll.u32 %s1935_s26, 6  ;;  %s1387_s14 = sshll.u32 %s2883_s29, 4  ;;  %s1388_s14 = int_to_ptr.vmem [resolvable:$true] %s1387_s14 }
  0x2a   : > { %369 = vmatpush.bf16.msra.mxu0 %v303_v3  ;;  %v301_v10 = vpack.c.bf16 %v295_v6, %v293_v5  ;;  %v302_v11 = vpack.c.bf16 %v296_v9, %v294_v8  ;;  %v1554_v12 = vld [vmem:[%s2942_s3] sm:$0xff]  ;;  %v1555_v16 = vld [vmem:[%s2942_s3 + $0x8] sm:$0xff]  ;;  %v309_v17 = vld [vmem:[%s2942_s3 + $0x10] sm:$0x3]  ;;  %s1386_s10 = scalar_lea.hbm %s2945_s6, %s1560_s15  ;;  %s1373_s26 = scalar_lea.sflag [#allocation6], %s2062_s9 }
  0x2b   : > { %392 = vmatpush.bf16.msra.mxu1 %v304_v7  ;;  %v432_v13 = vld [vmem:[%s2941_s2] sm:$0xf]  ;;  %v349_v18 = vunpack.c.l.b16 %v309_v17  ;;  %s1389_s17 = sshll.u32 %s1386_s10, 4  ;;  %s1881_s22 = scalar_lea.hbm %s2945_s6, 128  ;;  %s1390_s17 = int_to_ptr.hbm [resolvable:$true] %s1389_s17 }
  0x2c   : > { %435 = vperm.xlu0 %1628, %v432_v13   ;;  %v314_v15 = vld [vmem:[%s2943_s4 + $0x20] sm:$0xf]  ;;  %s1875_s18 = sshra.s32 %s1390_s17, 4  ;;  %s1876_s18 = int_to_ptr.hbm [resolvable:$true] %s1875_s18 }
  0x2d   : > { %v352_v19 = vpack.c.b16 %v349_v18, %v349_v18  ;;  %v427_v20 = vld [vmem:[%s2940_s1] sm:$0x3]  ;;  %s1877_s19 = scalar_lea.hbm %s1876_s18, 64  ;;  %p1882_p7 = scmp.lt.s32.totalorder %s1876_s18, %s2945_s6 }
  0x2e   : > { %370 = vmatpush.bf16.msra.mxu0 %v301_v10  ;;  %p1878_p4 = scmp.ne.s32.totalorder %s1876_s18, %s1877_s19  ;;  %p1883_p8 = scmp.lt.s32.totalorder %s1881_s22, %s1877_s19 }
  0x2f   : > { %393 = vmatpush.bf16.msra.mxu1 %v302_v11 }
  0x30   : > { %p1879_p5 = pnand %p1878_p4, %p2039_p9  ;;  %p1884_p10 = por %p1883_p8, %p1882_p7 }
  0x31   : > { %1492 = vmatmul.msk.bf16.vlgmr.msra.gmra.mxu0 %vm353_vm0, %v1554_v12 }
  0x32   : > { %448 = vmatpush.bf16.msrb.mxu0 %v303_v3  ;;  %1495 = vmatmul.msk.bf16.vlgmr.msra.gmra.mxu1 %vm353_vm0, %v1554_v12  ;;  %p1880_p6 = pneg %p1879_p5 }
  0x33   : > { %461 = vmatpush.bf16.msrb.mxu1 %v304_v7 }
  0x34   : > { %337 = vperm.xlu0 %1628, %v314_v15   ;;  %p1885_p13 = pnand %p1884_p10, %p1880_p6 }
  0x36   : > { %449 = vmatpush.bf16.msrb.mxu0 %v301_v10 }
  0x37   : > { %462 = vmatpush.bf16.msrb.mxu1 %v302_v11 }
  0x41   : > { %1493 = vmatmul.msk.bf16.gmra.mxu0 %vm353_vm0, %v1555_v16 }
  0x42   : > { %1496 = vmatmul.msk.bf16.gmra.mxu1 %vm353_vm0, %v1555_v16 }
  0x51   : > { %1494 = vmatmul.msk.bf16.gmra.mxu0 %vm353_vm0, %v352_v19 }
  0x52   : > { %1497 = vmatmul.msk.bf16.gmra.mxu1 %vm353_vm0, %v352_v19 }
  0x61   : > { %1498 = vmatmul.msk.bf16.vlgmr.msrb.gmra.mxu0 %vm353_vm0, %v427_v20 }
  0x62   : > { %1499 = vmatmul.msk.bf16.vlgmr.msrb.gmra.mxu1 %vm353_vm0, %v427_v20 }
  0x9e   : > { %v436_v27 = vpop.permute.xlu0 %435 }
  0xa6   : > { %v338_v30 = vpop.permute.xlu0 %337 }
  0xae   : > { %v2108_v21 = vpop.f32.mrf.mxu0 }
  0xaf   : > { %v2110_v22 = vpop.f32.mrf.mxu1 }
  0xb6   : > { %v2112_v23 = vpop.f32.mrf.mxu0 }
  0xb7   : > { %2975 = vst [vmem:[#allocation10_spill] sm:$0xff] %v2112_v23  ;;  %v2114_v24 = vpop.f32.mrf.mxu1 }
  0xb8   : > { %2976 = vst [vmem:[#allocation11_spill] sm:$0xff] %v2114_v24 }
  0xbe   : > { %v2116_v25 = vpop.f32.mrf.mxu0 }
  0xbf   : > { %2977 = vst [vmem:[#allocation12_spill] sm:$0xff] %v2116_v25  ;;  %v2118_v26 = vpop.f32.mrf.mxu1 }
  0xc0   : > { %2978 = vst [vmem:[#allocation13_spill] sm:$0xff] %v2118_v26 }
  0xc6   : > { %v2120_v28 = vpop.f32.mrf.mxu0 }
  0xc7   : > { %2979 = vst [vmem:[#allocation14_spill] sm:$0xff] %v2120_v28  ;;  %v2122_v29 = vpop.f32.mrf.mxu1 }
  0xc8   : > { %2980 = vst [vmem:[#allocation15_spill] sm:$0xff] %v2122_v29 }
  0xce   : > { %v382_v31 = vpop.f32.mrf.mxu0 }
  0xcf   : > { %v383_v32 = vadd.f32 %v382_v31, %v338_v30  ;;  %v405_v33 = vpop.f32.mrf.mxu1 }
  0xd0   : > { %v406_v34 = vadd.f32 %v405_v33, %v338_v30 }
  0xd2   : > { %v413_v35 = vpack.c.bf16 %v406_v34, %v383_v32 }
  0xd4   : > { %418 = vst [vmem:[#allocation2 + $0x20] sm:$0x33] %v413_v35 }
  0xd6   : > { %v384_v36 = vpop.f32.mrf.mxu0 }
  0xd7   : > { %v407_v37 = vpop.f32.mrf.mxu1 }
  0xdb   : > { %v472_v38 = vld [vmem:[#allocation2 + $0x20] sm:$0x33] }
  0xdc   : > { %v500_v39 = vunpack.c.l.b16 %v472_v38  ;;  %v501_v40 = vunpack.c.h.b16 %v472_v38 }
  0xde   : > { %v451_v41 = vpop.f32.mrf.mxu0  ;;  %v502_v42 = vpack.c.b16 %v500_v39, %v500_v39  ;;  %v503_v43 = vpack.c.b16 %v501_v40, %v501_v40 }
  0xdf   : > { %v452_v44 = vadd.f32 %v451_v41, %v436_v27  ;;  %v464_v45 = vpop.f32.mrf.mxu1 }
  0xe0   : > { %v465_v46 = vadd.f32 %v464_v45, %v436_v27  ;;  %v555_v47 = vsel %vm553_vm1, %v502_v42, 0  ;;  %v558_v48 = vsel %vm553_vm1, %v503_v43, 0 }
  0xe1   : > { %v473_v49 = vpack.c.bf16 %v452_v44, %v452_v44  ;;  %567 = vmatpush.bf16.msra.mxu2 %v555_v47  ;;  %656 = vmatpush.bf16.msra.mxu3 %v558_v48 }
  0xe2   : > { %v474_v50 = vpack.c.bf16 %v465_v46, %v465_v46 }
  0xe4   : > { %475 = vxpose.binary.xlu1.c.b16.start.end [1/2] (short) %v474_v50, %v473_v49, 128 }
  0xe6   : > { %v453_v51 = vpop.f32.mrf.mxu0 }
  0xe7   : > { %v466_v52 = vpop.f32.mrf.mxu1 }
 0x137   : > { %1630 = vset.pattern.permute.xlu1 %v1947_v14 }
 0x190   : > { %v483_v53 = vpop.trf.xlu1 }
 0x191   : > { %1500 = vmatmul.msk.bf16.vlgmr.msra.gmra.mxu2 %vm504_vm2, %v483_v53  ;;  %1516 = vmatmul.msk.bf16.vlgmr.msra.gmra.mxu3 %vm504_vm2, %v483_v53 }
 0x198   : > { %v484_v54 = vpop.trf.xlu1 }
 0x1a0   : > { %v485_v55 = vpop.trf.xlu1 }
 0x1a1   : > { %1501 = vmatmul.msk.bf16.gmra.mxu2 %vm504_vm2, %v485_v55  ;;  %1517 = vmatmul.msk.bf16.gmra.mxu3 %vm504_vm2, %v485_v55 }
 0x1a8   : > { %v486_v56 = vpop.trf.xlu1 }
 0x1b0   : > { %v487_v57 = vpop.trf.xlu1 }
 0x1b1   : > { %1502 = vmatmul.msk.bf16.gmra.mxu2 %vm504_vm2, %v487_v57  ;;  %1518 = vmatmul.msk.bf16.gmra.mxu3 %vm504_vm2, %v487_v57 }
 0x1b8   : > { %v488_v58 = vpop.trf.xlu1 }
 0x1c0   : > { %v489_v59 = vpop.trf.xlu1 }
 0x1c1   : > { %1503 = vmatmul.msk.bf16.gmra.mxu2 %vm504_vm2, %v489_v59  ;;  %1519 = vmatmul.msk.bf16.gmra.mxu3 %vm504_vm2, %v489_v59 }
 0x1c8   : > { %v490_v60 = vpop.trf.xlu1 }
 0x1d0   : > { %v491_v61 = vpop.trf.xlu1 }
 0x1d1   : > { %1504 = vmatmul.msk.bf16.gmra.mxu2 %vm504_vm2, %v491_v61  ;;  %1520 = vmatmul.msk.bf16.gmra.mxu3 %vm504_vm2, %v491_v61 }
 0x1d8   : > { %v492_v62 = vpop.trf.xlu1 }
 0x1e0   : > { %v493_v63 = vpop.trf.xlu1 }
 0x1e1   : > { %1505 = vmatmul.msk.bf16.gmra.mxu2 %vm504_vm2, %v493_v63  ;;  %1521 = vmatmul.msk.bf16.gmra.mxu3 %vm504_vm2, %v493_v63 }
 0x1e8   : > { %v494_v0 = vpop.trf.xlu1 }
 0x1f0   : > { %v495_v1 = vpop.trf.xlu1 }
 0x1f1   : > { %1506 = vmatmul.msk.bf16.gmra.mxu2 %vm504_vm2, %v495_v1  ;;  %1522 = vmatmul.msk.bf16.gmra.mxu3 %vm504_vm2, %v495_v1 }
 0x1f8   : > { %v496_v2 = vpop.trf.xlu1 }
 0x200   : > { %v497_v3 = vpop.trf.xlu1 }
 0x201   : > { %1507 = vmatmul.msk.bf16.gmra.mxu2 %vm504_vm2, %v497_v3  ;;  %1523 = vmatmul.msk.bf16.gmra.mxu3 %vm504_vm2, %v497_v3 }
 0x208   : > { %v498_v3 = vpop.trf.xlu1 }
 0x211   : > { %1508 = vmatmul.msk.bf16.gmra.mxu2 %vm504_vm2, %v484_v54  ;;  %1524 = vmatmul.msk.bf16.gmra.mxu3 %vm504_vm2, %v484_v54 }
 0x214   : > { %v2142_v4 = vpop.f32.mrf.mxu2  ;;  %v2144_v5 = vpop.f32.mrf.mxu3 }
 0x215   : > { %v738_v55 = vmax.f32 %v2142_v4, %v2144_v5 }
 0x21c   : > { %v2146_v6 = vpop.f32.mrf.mxu2  ;;  %v2148_v7 = vpop.f32.mrf.mxu3 }
 0x221   : > { %1509 = vmatmul.msk.bf16.gmra.mxu2 %vm504_vm2, %v486_v56  ;;  %1525 = vmatmul.msk.bf16.gmra.mxu3 %vm504_vm2, %v486_v56 }
 0x224   : > { %v2152_v8 = vpop.f32.mrf.mxu2  ;;  %v2154_v9 = vpop.f32.mrf.mxu3 }
 0x225   : > { %v744_v51 = vmax.f32 %v2152_v8, %v2154_v9 }
 0x22c   : > { %v2156_v10 = vpop.f32.mrf.mxu2  ;;  %v2158_v11 = vpop.f32.mrf.mxu3 }
 0x22d   : > { %v747_v1 = vmax.f32 %v2156_v10, %v2158_v11 }
 0x231   : > { %1510 = vmatmul.msk.bf16.gmra.mxu2 %vm504_vm2, %v488_v58  ;;  %1526 = vmatmul.msk.bf16.gmra.mxu3 %vm504_vm2, %v488_v58 }
 0x234   : > { %v2162_v12 = vpop.f32.mrf.mxu2  ;;  %v2164_v13 = vpop.f32.mrf.mxu3 }
 0x235   : > { %v750_v46 = vmax.f32 %v2162_v12, %v2164_v13 }
 0x23c   : > { %v2166_v14 = vpop.f32.mrf.mxu2  ;;  %v2168_v15 = vpop.f32.mrf.mxu3 }
 0x241   : > { %1511 = vmatmul.msk.bf16.gmra.mxu2 %vm504_vm2, %v490_v60  ;;  %1527 = vmatmul.msk.bf16.gmra.mxu3 %vm504_vm2, %v490_v60 }
 0x244   : > { %v2172_v16 = vpop.f32.mrf.mxu2  ;;  %v2174_v17 = vpop.f32.mrf.mxu3 }
 0x245   : > { %v756_v58 = vmax.f32 %v2172_v16, %v2174_v17 }
 0x24c   : > { %v2176_v18 = vpop.f32.mrf.mxu2  ;;  %v2178_v19 = vpop.f32.mrf.mxu3 }
 0x251   : > { %1512 = vmatmul.msk.bf16.gmra.mxu2 %vm504_vm2, %v492_v62  ;;  %1528 = vmatmul.msk.bf16.gmra.mxu3 %vm504_vm2, %v492_v62  ;;  %v759_v62 = vmax.f32 %v2176_v18, %v2178_v19 }
 0x254   : > { %v2182_v20 = vpop.f32.mrf.mxu2  ;;  %v2184_v27 = vpop.f32.mrf.mxu3 }
 0x255   : > { %v762_v50 = vmax.f32 %v2182_v20, %v2184_v27 }
 0x25c   : > { %v2186_v30 = vpop.f32.mrf.mxu2  ;;  %v2188_v31 = vpop.f32.mrf.mxu3 }
 0x25d   : > { %v765_v54 = vmax.f32 %v2186_v30, %v2188_v31 }
 0x261   : > { %1513 = vmatmul.msk.bf16.gmra.mxu2 %vm504_vm2, %v494_v0  ;;  %1529 = vmatmul.msk.bf16.gmra.mxu3 %vm504_vm2, %v494_v0  ;;  %v753_v0 = vmax.f32 %v2166_v14, %v2168_v15 }
 0x264   : > { %v2192_v32 = vpop.f32.mrf.mxu2  ;;  %v2194_v33 = vpop.f32.mrf.mxu3 }
 0x265   : > { %v768_v41 = vmax.f32 %v2192_v32, %v2194_v33 }
 0x26c   : > { %v2196_v34 = vpop.f32.mrf.mxu2  ;;  %v2198_v35 = vpop.f32.mrf.mxu3 }
 0x26d   : > { %v771_v45 = vmax.f32 %v2196_v34, %v2198_v35 }
 0x271   : > { %1514 = vmatmul.msk.bf16.gmra.mxu2 %vm504_vm2, %v496_v2  ;;  %1530 = vmatmul.msk.bf16.gmra.mxu3 %vm504_vm2, %v496_v2  ;;  %v741_v2 = vmax.f32 %v2146_v6, %v2148_v7 }
 0x274   : > { %v2202_v36 = vpop.f32.mrf.mxu2  ;;  %v2204_v37 = vpop.f32.mrf.mxu3 }
 0x275   : > { %v774_v38 = vmax.f32 %v2202_v36, %v2204_v37 }
 0x277   : > { %775 = vmax.xlane.f32.xlu2 %v774_v38 }
 0x27c   : > { %v2208_v39 = vpop.f32.mrf.mxu2  ;;  %v2210_v40 = vpop.f32.mrf.mxu3 }
 0x27d   : > { %v777_v42 = vmax.f32 %v2208_v39, %v2210_v40 }
 0x27f   : > { %769 = vmax.xlane.f32.xlu2 %v768_v41  ;;  %778 = vmax.xlane.f32.xlu0 %v777_v42 }
 0x281   : > { %1515 = vmatmul.msk.bf16.gmra.mxu2 %vm504_vm2, %v498_v3  ;;  %1531 = vmatmul.msk.bf16.gmra.mxu3 %vm504_vm2, %v498_v3 }
 0x284   : > { %v2216_v43 = vpop.f32.mrf.mxu2  ;;  %v2218_v44 = vpop.f32.mrf.mxu3 }
 0x285   : > { %v780_v47 = vmax.f32 %v2216_v43, %v2218_v44 }
 0x287   : > { %772 = vmax.xlane.f32.xlu2 %v771_v45  ;;  %751 = vmax.xlane.f32.xlu0 %v750_v46 }
 0x288   : > { %781 = vmax.xlane.f32.xlu1 %v780_v47 }
 0x28c   : > { %v2226_v48 = vpop.f32.mrf.mxu2  ;;  %v2228_v49 = vpop.f32.mrf.mxu3 }
 0x28d   : > { %v783_v38 = vmax.f32 %v2226_v48, %v2228_v49 }
 0x28f   : > { %763 = vmax.xlane.f32.xlu2 %v762_v50  ;;  %745 = vmax.xlane.f32.xlu0 %v744_v51 }
 0x294   : > { %v2234_v52 = vpop.f32.mrf.mxu2  ;;  %v2236_v53 = vpop.f32.mrf.mxu3 }
 0x295   : > { %2981 = vst [vmem:[#allocation16_spill] sm:$0xff] %v2234_v52  ;;  %v786_v59 = vmax.f32 %v2234_v52, %v2236_v53 }
 0x296   : > { %2982 = vst [vmem:[#allocation17_spill] sm:$0xff] %v2236_v53 }
 0x297   : > { %766 = vmax.xlane.f32.xlu2 %v765_v54  ;;  %739 = vmax.xlane.f32.xlu0 %v738_v55 }
 0x29c   : > { %v2242_v56 = vpop.f32.mrf.mxu2  ;;  %v2244_v57 = vpop.f32.mrf.mxu3 }
 0x29d   : > { %2983 = vst [vmem:[#allocation18_spill] sm:$0xff] %v2242_v56  ;;  %v789_v41 = vmax.f32 %v2242_v56, %v2244_v57 }
 0x29e   : > { %2984 = vst [vmem:[#allocation19_spill] sm:$0xff] %v2244_v57 }
 0x29f   : > { %757 = vmax.xlane.f32.xlu2 %v756_v58  ;;  %787 = vmax.xlane.f32.xlu0 %v786_v59 }
 0x2a4   : > { %v2250_v60 = vpop.f32.mrf.mxu2  ;;  %v2252_v61 = vpop.f32.mrf.mxu3 }
 0x2a5   : > { %2985 = vst [vmem:[#allocation20_spill] sm:$0xff] %v2250_v60  ;;  %v792_v63 = vmax.f32 %v2250_v60, %v2252_v61 }
 0x2a6   : > { %2986 = vst [vmem:[#allocation21_spill] sm:$0xff] %v2252_v61 }
 0x2a7   : > { %760 = vmax.xlane.f32.xlu2 %v759_v62  ;;  %793 = vmax.xlane.f32.xlu0 %v792_v63 }
 0x2ac   : > { %v2276_v47 = vpop.f32.mrf.mxu2  ;;  %v2278_v50 = vpop.f32.mrf.mxu3 }
 0x2ad   : > { %2987 = vst [vmem:[#allocation22_spill] sm:$0xff] %v2278_v50 }
 0x2af   : > { %754 = vmax.xlane.f32.xlu2 %v753_v0 }
 0x2b4   : > { %v2284_v59 = vpop.f32.mrf.mxu2  ;;  %v2288_v0 = vpop.f32.mrf.mxu3 }
 0x2b5   : > { %2988 = vst [vmem:[#allocation23_spill] sm:$0xff] %v2284_v59 }
 0x2b6   : > { %2989 = vst [vmem:[#allocation24_spill] sm:$0xff] %v2288_v0 }
 0x2b7   : > { %748 = vmax.xlane.f32.xlu2 %v747_v1 }
 0x2bc   : > { %v2294_v25 = vpop.f32.mrf.mxu2  ;;  %v2296_v23 = vpop.f32.mrf.mxu3 }
 0x2bf   : > { %742 = vmax.xlane.f32.xlu2 %v741_v2 }
 0x2c7   : > { %784 = vmax.xlane.f32.xlu2 %v783_v38 }
 0x2cf   : > { %790 = vmax.xlane.f32.xlu2 %v789_v41 }
 0x2ea   : > { %v2270_v42 = vpop.xlane.xlu2 %775 }
 0x2f2   : > { %v2272_v45 = vpop.xlane.xlu2 %769  ;;  %v2274_v46 = vpop.xlane.xlu0 %778 }
 0x2fa   : > { %v2280_v51 = vpop.xlane.xlu2 %772  ;;  %v752_v54 = vpop.xlane.xlu0 %751 }
 0x302   : > { %v2282_v55 = vpop.xlane.xlu2 %763  ;;  %v746_v58 = vpop.xlane.xlu0 %745 }
 0x303   : > { %v838_v62 = vsub.f32 %v2152_v8, %v746_v58  ;;  %v839_v63 = vsub.f32 %v2154_v9, %v746_v58  ;;  %v842_v58 = vsub.f32 %v2162_v12, %v752_v54  ;;  %v2312_v12 = vpop.f32.mrf.mxu3 }
 0x305   : > { %v906_v1 = vmul.f32 1.442695, %v838_v62  ;;  %v908_v2 = vmul.f32 1.442695, %v839_v63  ;;  %v843_v63 = vsub.f32 %v2164_v13, %v752_v54  ;;  %v798_v13 = vmax.f32 %v2284_v59, %v2288_v0 }
 0x307   : > { %1631 = vpow2.f32 %v906_v1  ;;  %v914_v1 = vmul.f32 1.442695, %v842_v58 }
 0x308   : > { %1633 = vpow2.f32 %v908_v2  ;;  %v916_v2 = vmul.f32 1.442695, %v843_v63 }
 0x30a   : > { %v2290_v3 = vpop.xlane.xlu2 %766  ;;  %v740_v38 = vpop.xlane.xlu0 %739 }
 0x30b   : > { %v834_v41 = vsub.f32 %v2142_v4, %v740_v38  ;;  %v835_v26 = vsub.f32 %v2144_v5, %v740_v38  ;;  %v2330_v29 = vpop.f32.mrf.mxu3 }
 0x30d   : > { %v898_v24 = vmul.f32 1.442695, %v834_v41  ;;  %v900_v8 = vmul.f32 1.442695, %v835_v26  ;;  %v2298_v9 = vpop.eup %1631  ;;  %v2308_v26 = vpop.f32.mrf.mxu2 }
 0x30e   : > { %2990 = vst [vmem:[#allocation25_spill] sm:$0xff] %v2298_v9  ;;  %v2301_v62 = vpop.eup %1633 }
 0x30f   : > { %2991 = vst [vmem:[#allocation26_spill] sm:$0xff] %v2301_v62  ;;  %1635 = vpow2.f32 %v898_v24  ;;  %v1032_v4 = vadd.f32 %v2301_v62, %v2298_v9 }
 0x310   : > { %1637 = vpow2.f32 %v900_v8 }
 0x311   : > { %1033 = vadd.xlane.f32.xlu0 %v1032_v4  ;;  %1639 = vpow2.f32 %v914_v1 }
 0x312   : > { %v758_v5 = vpop.xlane.xlu2 %757  ;;  %1641 = vpow2.f32 %v916_v2 }
 0x313   : > { %v846_v63 = vsub.f32 %v2172_v16, %v758_v5  ;;  %v847_v4 = vsub.f32 %v2174_v17, %v758_v5  ;;  %v2340_v62 = vpop.f32.mrf.mxu3 }
 0x315   : > { %v2306_v38 = vpop.eup %1635  ;;  %v2326_v1 = vpop.f32.mrf.mxu2 }
 0x316   : > { %2992 = vst [vmem:[#allocation27_spill] sm:$0xff] %v2306_v38  ;;  %v2310_v41 = vpop.eup %1637 }
 0x317   : > { %2993 = vst [vmem:[#allocation28_spill] sm:$0xff] %v2310_v41  ;;  %v1026_v24 = vadd.f32 %v2310_v41, %v2306_v38  ;;  %v2320_v8 = vpop.eup %1639  ;;  %v922_v41 = vmul.f32 1.442695, %v846_v63  ;;  %v850_v63 = vsub.f32 %v2182_v20, %v2282_v55 }
 0x318   : > { %v2322_v58 = vpop.eup %1641 }
 0x319   : > { %1027 = vadd.xlane.f32.xlu1 %v1026_v24  ;;  %799 = vmax.xlane.f32.xlu0 %v798_v13  ;;  %v1038_v2 = vadd.f32 %v2322_v58, %v2320_v8  ;;  %v924_v24 = vmul.f32 1.442695, %v847_v4  ;;  %1643 = vpow2.f32 %v922_v41  ;;  %v804_v13 = vmax.f32 %v2308_v26, %v2312_v12 }
 0x31a   : > { %v2318_v54 = vpop.xlane.xlu2 %760 }
 0x31b   : > { %1645 = vpow2.f32 %v924_v24  ;;  %v851_v24 = vsub.f32 %v2184_v27, %v2282_v55  ;;  %v2360_v55 = vpop.f32.mrf.mxu3 }
 0x31d   : > { %v2338_v38 = vpop.f32.mrf.mxu2 }
 0x31f   : > { %v2342_v9 = vpop.eup %1643 }
 0x321   : > { %1039 = vadd.xlane.f32.xlu0 %v1038_v2  ;;  %v2346_v2 = vpop.eup %1645 }
 0x322   : > { %v2332_v28 = vpop.xlane.xlu2 %754 }
 0x325   : > { %v2358_v27 = vpop.f32.mrf.mxu2 }
 0x329   : > { %805 = vmax.xlane.f32.xlu0 %v804_v13  ;;  %v932_v13 = vmul.f32 1.442695, %v851_v24  ;;  %v854_v24 = vsub.f32 %v2192_v32, %v2272_v45  ;;  %v844_v32 = vsub.f32 %v2166_v14, %v2332_v28 }
 0x32a   : > { %v749_v16 = vpop.xlane.xlu2 %748 }
 0x32b   : > { %v840_v17 = vsub.f32 %v2156_v10, %v749_v16  ;;  %v841_v5 = vsub.f32 %v2158_v11, %v749_v16  ;;  %v930_v10 = vmul.f32 1.442695, %v850_v63  ;;  %v1044_v11 = vadd.f32 %v2346_v2, %v2342_v9 }
 0x32d   : > { %v910_v41 = vmul.f32 1.442695, %v840_v17  ;;  %v912_v4 = vmul.f32 1.442695, %v841_v5 }
 0x32f   : > { %1647 = vpow2.f32 %v910_v41 }
 0x330   : > { %1649 = vpow2.f32 %v912_v4 }
 0x331   : > { %1045 = vadd.xlane.f32.xlu0 %v1044_v11  ;;  %1651 = vpow2.f32 %v930_v10  ;;  %v2380_v11 = vpop.f32.mrf.mxu3 }
 0x332   : > { %v743_v16 = vpop.xlane.xlu2 %742  ;;  %1653 = vpow2.f32 %v932_v13  ;;  %v855_v13 = vsub.f32 %v2194_v33, %v2272_v45 }
 0x333   : > { %v836_v61 = vsub.f32 %v2146_v6, %v743_v16  ;;  %v837_v20 = vsub.f32 %v2148_v7, %v743_v16  ;;  %v810_v6 = vmax.f32 %v2338_v38, %v2340_v62 }
 0x335   : > { %v2354_v17 = vpop.eup %1647  ;;  %v902_v5 = vmul.f32 1.442695, %v836_v61  ;;  %v904_v60 = vmul.f32 1.442695, %v837_v20  ;;  %v938_v20 = vmul.f32 1.442695, %v854_v24 }
 0x336   : > { %2994 = vst [vmem:[#allocation29_spill] sm:$0xff] %v2354_v17  ;;  %v2356_v57 = vpop.eup %1649 }
 0x337   : > { %2995 = vst [vmem:[#allocation30_spill] sm:$0xff] %v2356_v57  ;;  %1655 = vpow2.f32 %v902_v5  ;;  %v1035_v63 = vadd.f32 %v2356_v57, %v2354_v17  ;;  %v2366_v7 = vpop.eup %1651  ;;  %v940_v5 = vmul.f32 1.442695, %v855_v13  ;;  %v801_v13 = vmax.f32 %v2294_v25, %v2296_v23 }
 0x338   : > { %1657 = vpow2.f32 %v904_v60  ;;  %v2368_v61 = vpop.eup %1653  ;;  %v2378_v60 = vpop.f32.mrf.mxu2 }
 0x339   : > { %1036 = vadd.xlane.f32.xlu1 %v1035_v63  ;;  %811 = vmax.xlane.f32.xlu0 %v810_v6  ;;  %v1050_v16 = vadd.f32 %v2368_v61, %v2366_v7  ;;  %v845_v63 = vsub.f32 %v2168_v15, %v2332_v28  ;;  %1659 = vpow2.f32 %v938_v20  ;;  %v795_v6 = vmax.f32 %v2276_v47, %v2278_v50  ;;  %v2396_v24 = vpop.f32.mrf.mxu3 }
 0x33a   : > { %1661 = vpow2.f32 %v940_v5  ;;  %v816_v33 = vmax.f32 %v2378_v60, %v2380_v11  ;;  %v858_v15 = vsub.f32 %v2202_v36, %v2270_v42 }
 0x33d   : > { %v2370_v41 = vpop.eup %1655 }
 0x33e   : > { %2996 = vst [vmem:[#allocation31_spill] sm:$0xff] %v2370_v41  ;;  %v2372_v4 = vpop.eup %1657 }
 0x33f   : > { %2997 = vst [vmem:[#allocation32_spill] sm:$0xff] %v2372_v4  ;;  %v1029_v10 = vadd.f32 %v2372_v4, %v2370_v41  ;;  %v918_v4 = vmul.f32 1.442695, %v844_v32  ;;  %v2398_v14 = vpop.eup %1659 }
 0x340   : > { %v2394_v45 = vpop.f32.mrf.mxu2  ;;  %v2400_v28 = vpop.eup %1661 }
 0x341   : > { %1030 = vadd.xlane.f32.xlu2 %v1029_v10  ;;  %1051 = vadd.xlane.f32.xlu0 %v1050_v16  ;;  %v920_v10 = vmul.f32 1.442695, %v845_v63  ;;  %1663 = vpow2.f32 %v918_v4  ;;  %v859_v16 = vsub.f32 %v2204_v37, %v2270_v42  ;;  %v1056_v20 = vadd.f32 %v2400_v28, %v2398_v14  ;;  %v2412_v32 = vpop.f32.mrf.mxu3 }
 0x342   : > { %v946_v63 = vmul.f32 1.442695, %v858_v15  ;;  %v849_v37 = vsub.f32 %v2178_v19, %v2318_v54 }
 0x343   : > { %1665 = vpow2.f32 %v920_v10  ;;  %v948_v36 = vmul.f32 1.442695, %v859_v16 }
 0x344   : > { %1667 = vpow2.f32 %v946_v63  ;;  %v807_v63 = vmax.f32 %v2326_v1, %v2330_v29 }
 0x345   : > { %1669 = vpow2.f32 %v948_v36 }
 0x347   : > { %v2414_v4 = vpop.eup %1663 }
 0x348   : > { %v2410_v5 = vpop.f32.mrf.mxu2 }
 0x349   : > { %796 = vmax.xlane.f32.xlu2 %v795_v6  ;;  %817 = vmax.xlane.f32.xlu0 %v816_v33  ;;  %v2416_v6 = vpop.eup %1665  ;;  %v848_v33 = vsub.f32 %v2176_v18, %v2318_v54  ;;  %v822_v15 = vmax.f32 %v2410_v5, %v2412_v32  ;;  %v2428_v41 = vpop.f32.mrf.mxu3 }
 0x34a   : > { %v1041_v42 = vadd.f32 %v2416_v6, %v2414_v4  ;;  %v2430_v18 = vpop.eup %1667 }
 0x34b   : > { %v926_v10 = vmul.f32 1.442695, %v848_v33  ;;  %v2432_v19 = vpop.eup %1669 }
 0x34c   : > { %v1062_v33 = vadd.f32 %v2432_v19, %v2430_v18 }
 0x34d   : > { %1671 = vpow2.f32 %v926_v10 }
 0x350   : > { %v2426_v16 = vpop.f32.mrf.mxu2 }
 0x351   : > { %802 = vmax.xlane.f32.xlu2 %v801_v13  ;;  %1057 = vadd.xlane.f32.xlu0 %v1056_v20  ;;  %v928_v13 = vmul.f32 1.442695, %v849_v37  ;;  %v782_v20 = vpop.xlane.xlu1 %781 }
 0x352   : > { %v862_v54 = vsub.f32 %v2216_v43, %v782_v20  ;;  %v863_v36 = vsub.f32 %v2218_v44, %v782_v20  ;;  %v852_v43 = vsub.f32 %v2186_v30, %v2290_v3  ;;  %v853_v44 = vsub.f32 %v2188_v31, %v2290_v3 }
 0x353   : > { %1673 = vpow2.f32 %v928_v13  ;;  %v2440_v37 = vpop.eup %1671  ;;  %v2446_v13 = vpop.f32.mrf.mxu3  ;;  %v813_v30 = vmax.f32 %v2358_v27, %v2360_v55 }
 0x354   : > { %v956_v10 = vmul.f32 1.442695, %v863_v36  ;;  %v936_v36 = vmul.f32 1.442695, %v853_v44  ;;  %v857_v44 = vsub.f32 %v2198_v35, %v2280_v51  ;;  %v860_v35 = vsub.f32 %v2208_v39, %v2274_v46 }
 0x358   : > { %v2444_v57 = vpop.f32.mrf.mxu2 }
 0x359   : > { %1042 = vadd.xlane.f32.xlu2 %v1041_v42  ;;  %823 = vmax.xlane.f32.xlu0 %v822_v15  ;;  %v954_v42 = vmul.f32 1.442695, %v862_v54  ;;  %v2442_v15 = vpop.eup %1673  ;;  %v828_v54 = vmax.f32 %v2444_v57, %v2446_v13 }
 0x35a   : > { %v1047_v20 = vadd.f32 %v2442_v15, %v2440_v37 }
 0x35b   : > { %1675 = vpow2.f32 %v954_v42 }
 0x35c   : > { %1677 = vpow2.f32 %v956_v10  ;;  %v2468_v10 = vpop.xlane.xlu0 %787 }
 0x35d   : > { %3000 = vst [vmem:[#allocation35_spill] sm:$0xff] %v2468_v10  ;;  %v310_v10 = vld [vmem:[%s2943_s4] sm:$0xff] }
 0x361   : > { %808 = vmax.xlane.f32.xlu2 %v807_v63  ;;  %1063 = vadd.xlane.f32.xlu0 %v1062_v33  ;;  %v934_v63 = vmul.f32 1.442695, %v852_v43  ;;  %v2456_v33 = vpop.eup %1675  ;;  %v856_v43 = vsub.f32 %v2196_v34, %v2280_v51  ;;  %v861_v51 = vsub.f32 %v2210_v40, %v2274_v46 }
 0x362   : > { %2998 = vst [vmem:[#allocation33_spill] sm:$0xff] %v2456_v33  ;;  %v2458_v17 = vpop.eup %1677 }
 0x363   : > { %1679 = vpow2.f32 %v934_v63  ;;  %2999 = vst [vmem:[#allocation34_spill] sm:$0xff] %v2458_v17  ;;  %v1068_v31 = vadd.f32 %v2458_v17, %v2456_v33  ;;  %v944_v63 = vmul.f32 1.442695, %v857_v44 }
 0x364   : > { %1681 = vpow2.f32 %v936_v36  ;;  %v2476_v36 = vpop.xlane.xlu0 %793 }
 0x365   : > { %3001 = vst [vmem:[#allocation36_spill] sm:$0xff] %v2476_v36 }
 0x369   : > { %1048 = vadd.xlane.f32.xlu2 %v1047_v20  ;;  %829 = vmax.xlane.f32.xlu0 %v828_v54  ;;  %v2464_v3 = vpop.eup %1679  ;;  %v942_v54 = vmul.f32 1.442695, %v856_v43 }
 0x36a   : > { %v2466_v42 = vpop.eup %1681 }
 0x36b   : > { %v1053_v20 = vadd.f32 %v2466_v42, %v2464_v3  ;;  %1683 = vpow2.f32 %v942_v54  ;;  %v952_v54 = vmul.f32 1.442695, %v861_v51  ;;  %v2504_v51 = vpop.f32.mrf.mxu3 }
 0x36c   : > { %1685 = vpow2.f32 %v944_v63 }
 0x371   : > { %814 = vmax.xlane.f32.xlu2 %v813_v30  ;;  %1069 = vadd.xlane.f32.xlu0 %v1068_v31  ;;  %v819_v30 = vmax.f32 %v2394_v45, %v2396_v24  ;;  %v2480_v31 = vpop.eup %1683 }
 0x372   : > { %v2482_v34 = vpop.eup %1685 }
 0x373   : > { %v1059_v44 = vadd.f32 %v2482_v34, %v2480_v31 }
 0x379   : > { %1054 = vadd.xlane.f32.xlu2 %v1053_v20  ;;  %v950_v20 = vmul.f32 1.442695, %v860_v35  ;;  %v2502_v35 = vpop.f32.mrf.mxu2 }
 0x37b   : > { %1687 = vpow2.f32 %v950_v20  ;;  %v831_v20 = vmax.f32 %v2502_v35, %v2504_v51 }
 0x37c   : > { %1689 = vpow2.f32 %v952_v54  ;;  %v785_v54 = vpop.xlane.xlu2 %784 }
 0x381   : > { %820 = vmax.xlane.f32.xlu2 %v819_v30  ;;  %v825_v30 = vmax.f32 %v2426_v16, %v2428_v41  ;;  %v2496_v39 = vpop.eup %1687 }
 0x382   : > { %v2498_v17 = vpop.eup %1689 }
 0x383   : > { %v1065_v46 = vadd.f32 %v2498_v17, %v2496_v39 }
 0x384   : > { %v2488_v43 = vpop.xlane.xlu0 %1033 }
 0x385   : > { %3002 = vst [vmem:[#allocation37_spill] sm:$0xff] %v2488_v43  ;;  %v2510_v43 = vpop.xlane.xlu2 %790 }
 0x386   : > { %3004 = vst [vmem:[#allocation39_spill] sm:$0xff] %v2510_v43 }
 0x389   : > { %1060 = vadd.xlane.f32.xlu2 %v1059_v44 }
 0x38c   : > { %v2492_v63 = vpop.xlane.xlu0 %799 }
 0x38d   : > { %3003 = vst [vmem:[#allocation38_spill] sm:$0xff] %v2492_v63 }
 0x391   : > { %826 = vmax.xlane.f32.xlu2 %v825_v30 }
 0x394   : > { %v1040_v40 = vpop.xlane.xlu0 %1039 }
 0x399   : > { %1066 = vadd.xlane.f32.xlu2 %v1065_v46 }
 0x39c   : > { %v2506_v44 = vpop.xlane.xlu0 %805 }
 0x3a1   : > { %832 = vmax.xlane.f32.xlu2 %v831_v20 }
 0x3a4   : > { %v1046_v30 = vpop.xlane.xlu0 %1045 }
 0x3ac   : > { %v812_v33 = vpop.xlane.xlu0 %811 }
 0x3ad   : > { %v882_v36 = vsub.f32 %v2338_v38, %v812_v33  ;;  %v883_v56 = vsub.f32 %v2340_v62, %v812_v33  ;;  %v864_v33 = vsub.f32 %v2226_v48, %v785_v54 }
 0x3af   : > { %v994_v46 = vmul.f32 1.442695, %v882_v36  ;;  %v996_v53 = vmul.f32 1.442695, %v883_v56  ;;  %v865_v36 = vsub.f32 %v2228_v49, %v785_v54 }
 0x3b1   : > { %1691 = vpow2.f32 %v994_v46  ;;  %v960_v59 = vmul.f32 1.442695, %v865_v36 }
 0x3b2   : > { %1693 = vpow2.f32 %v996_v53 }
 0x3b3   : > { %1695 = vrcp.f32 %v1040_v40 }
 0x3b4   : > { %v2514_v52 = vpop.xlane.xlu2 %1030  ;;  %v1052_v53 = vpop.xlane.xlu0 %1051 }
 0x3b5   : > { %3005 = vst [vmem:[#allocation40_spill] sm:$0xff] %v2514_v52 }
 0x3b7   : > { %v2519_v20 = vpop.eup %1691 }
 0x3b8   : > { %v2521_v0 = vpop.eup %1693 }
 0x3b9   : > { %317 = vperm.xlu2 %1629, %v310_v10   ;;  %3006 = vst [vmem:[#allocation41_spill] sm:$0xff] %v2521_v0  ;;  %v1098_v38 = vadd.f32 %v2521_v0, %v2519_v20  ;;  %v1696_v46 = vpop.eup %1695  ;;  %v958_v10 = vmul.f32 1.442695, %v864_v33 }
 0x3ba   : > { %v2534_v0 = vmul.f32 %v1696_v46, %v2320_v8  ;;  %v2540_v40 = vmul.f32 %v1696_v46, %v2322_v58 }
 0x3bb   : > { %1099 = vadd.xlane.f32.xlu0 %v1098_v38 }
 0x3bc   : > { %v2525_v43 = vpop.xlane.xlu2 %796  ;;  %v818_v63 = vpop.xlane.xlu0 %817 }
 0x3bd   : > { %v886_v49 = vsub.f32 %v2378_v60, %v818_v63  ;;  %v887_v8 = vsub.f32 %v2380_v11, %v818_v63 }
 0x3bf   : > { %v1004_v33 = vmul.f32 1.442695, %v887_v8 }
 0x3c4   : > { %v2527_v56 = vpop.xlane.xlu2 %802  ;;  %v1058_v60 = vpop.xlane.xlu0 %1057 }
 0x3cc   : > { %v1043_v62 = vpop.xlane.xlu2 %1042 }
 0x3cd   : > { %1697 = vrcp.f32 %v1043_v62 }
 0x3ce   : > { %1699 = vpow2.f32 %v958_v10 }
 0x3cf   : > { %1701 = vpow2.f32 %v960_v59 }
 0x3d0   : > { %1703 = vrcp.f32 %v1046_v30 }
 0x3d3   : > { %v1698_v52 = vpop.eup %1697 }
 0x3d4   : > { %v2531_v50 = vpop.xlane.xlu2 %808  ;;  %v2537_v38 = vmul.f32 %v1698_v52, %v2414_v4  ;;  %v2543_v48 = vmul.f32 %v1698_v52, %v2416_v6  ;;  %v1002_v4 = vmul.f32 1.442695, %v886_v49  ;;  %v2551_v58 = vpop.eup %1699 }
 0x3d5   : > { %v2553_v52 = vpop.eup %1701 }
 0x3d6   : > { %v1071_v6 = vadd.f32 %v2553_v52, %v2551_v58  ;;  %v1704_v46 = vpop.eup %1703 }
 0x3d7   : > { %v2560_v63 = vmul.f32 %v1704_v46, %v2342_v9  ;;  %v2566_v49 = vmul.f32 %v1704_v46, %v2346_v2 }
 0x3dc   : > { %v1049_v36 = vpop.xlane.xlu2 %1048 }
 0x3dd   : > { %1705 = vrcp.f32 %v1049_v36 }
 0x3de   : > { %1707 = vpow2.f32 %v1002_v4 }
 0x3df   : > { %1709 = vpow2.f32 %v1004_v33 }
 0x3e0   : > { %1711 = vrcp.f32 %v1052_v53 }
 0x3e2   : > { %1072 = vadd.xlane.f32.xlu2 %v1071_v6 }
 0x3e3   : > { %v1706_v59 = vpop.eup %1705 }
 0x3e4   : > { %v2557_v10 = vpop.eup %1707  ;;  %v815_v11 = vpop.xlane.xlu2 %814  ;;  %v2563_v30 = vmul.f32 %v1706_v59, %v2440_v37  ;;  %v2569_v8 = vmul.f32 %v1706_v59, %v2442_v15  ;;  %v878_v37 = vsub.f32 %v2308_v26, %v2506_v44  ;;  %v879_v15 = vsub.f32 %v2312_v12, %v2506_v44 }
 0x3e5   : > { %v2571_v4 = vpop.eup %1709  ;;  %v884_v33 = vsub.f32 %v2358_v27, %v815_v11  ;;  %v885_v36 = vsub.f32 %v2360_v55, %v815_v11  ;;  %v824_v59 = vpop.xlane.xlu0 %823  ;;  %v880_v26 = vsub.f32 %v2326_v1, %v2531_v50  ;;  %v881_v44 = vsub.f32 %v2330_v29, %v2531_v50 }
 0x3e6   : > { %v1104_v27 = vadd.f32 %v2571_v4, %v2557_v10  ;;  %v986_v55 = vmul.f32 1.442695, %v878_v37  ;;  %v988_v11 = vmul.f32 1.442695, %v879_v15  ;;  %v1712_v54 = vpop.eup %1711  ;;  %v876_v1 = vsub.f32 %v2294_v25, %v2527_v56  ;;  %v3012_v25 = vld [vmem:[#allocation16_spill] sm:$0xff] }
 0x3e7   : > { %v998_v2 = vmul.f32 1.442695, %v884_v33  ;;  %v1000_v46 = vmul.f32 1.442695, %v885_v36  ;;  %v2598_v37 = vmul.f32 %v1712_v54, %v2366_v7 }
 0x3e9   : > { %1713 = vpow2.f32 %v998_v2  ;;  %v2601_v2 = vmul.f32 %v1712_v54, %v2368_v61  ;;  %v877_v61 = vsub.f32 %v2296_v23, %v2527_v56 }
 0x3ea   : > { %1715 = vpow2.f32 %v1000_v46  ;;  %1105 = vadd.xlane.f32.xlu2 %v1104_v27  ;;  %v992_v46 = vmul.f32 1.442695, %v881_v44 }
 0x3eb   : > { %v984_v56 = vmul.f32 1.442695, %v877_v61 }
 0x3ec   : > { %v1055_v62 = vpop.xlane.xlu2 %1054 }
 0x3ed   : > { %1717 = vrcp.f32 %v1055_v62  ;;  %v2595_v33 = vpop.xlane.xlu0 %1063  ;;  %v990_v62 = vmul.f32 1.442695, %v880_v26 }
 0x3ee   : > { %1719 = vpow2.f32 %v986_v55 }
 0x3ef   : > { %v2585_v9 = vpop.eup %1713  ;;  %1721 = vpow2.f32 %v988_v11 }
 0x3f0   : > { %v2589_v12 = vpop.eup %1715  ;;  %1723 = vrcp.f32 %v1058_v60 }
 0x3f1   : > { %v1101_v53 = vadd.f32 %v2589_v12, %v2585_v9  ;;  %1725 = vpow2.f32 %v990_v62 }
 0x3f2   : > { %1727 = vpow2.f32 %v992_v46 }
 0x3f3   : > { %v1718_v36 = vpop.eup %1717  ;;  %1102 = vadd.xlane.f32.xlu1 %v1101_v53 }
 0x3f4   : > { %v821_v15 = vpop.xlane.xlu2 %820  ;;  %v2606_v29 = vmul.f32 %v1718_v36, %v2464_v3  ;;  %v2609_v50 = vmul.f32 %v1718_v36, %v2466_v42  ;;  %v2611_v27 = vpop.eup %1719  ;;  %v890_v42 = vsub.f32 %v2410_v5, %v824_v59  ;;  %v3011_v3 = vld [vmem:[#allocation35_spill] sm:$0xff] }
 0x3f5   : > { %v888_v55 = vsub.f32 %v2394_v45, %v821_v15  ;;  %v889_v7 = vsub.f32 %v2396_v24, %v821_v15  ;;  %v2615_v11 = vpop.eup %1721  ;;  %v982_v45 = vmul.f32 1.442695, %v876_v1  ;;  %v891_v24 = vsub.f32 %v2412_v32, %v824_v59  ;;  %v830_v36 = vpop.xlane.xlu0 %829 }
 0x3f6   : > { %v1092_v23 = vadd.f32 %v2615_v11, %v2611_v27  ;;  %v1010_v60 = vmul.f32 1.442695, %v890_v42  ;;  %v1724_v44 = vpop.eup %1723  ;;  %v894_v59 = vsub.f32 %v2444_v57, %v830_v36  ;;  %v895_v15 = vsub.f32 %v2446_v13, %v830_v36 }
 0x3f7   : > { %v1006_v54 = vmul.f32 1.442695, %v888_v55  ;;  %v1008_v26 = vmul.f32 1.442695, %v889_v7  ;;  %v1012_v53 = vmul.f32 1.442695, %v891_v24  ;;  %v2627_v62 = vpop.eup %1725 }
 0x3f8   : > { %v2629_v1 = vpop.eup %1727 }
 0x3f9   : > { %1729 = vpow2.f32 %v1006_v54  ;;  %v1095_v55 = vadd.f32 %v2629_v1, %v2627_v62  ;;  %v1018_v54 = vmul.f32 1.442695, %v894_v59 }
 0x3fa   : > { %1731 = vpow2.f32 %v1008_v26  ;;  %v2644_v26 = vmul.f32 %v1724_v44, %v2398_v14 }
 0x3fb   : > { %1093 = vadd.xlane.f32.xlu1 %v1092_v23  ;;  %1733 = vpow2.f32 %v982_v45  ;;  %v1020_v45 = vmul.f32 1.442695, %v895_v15  ;;  %v2652_v23 = vmul.f32 %v1724_v44, %v2400_v28 }
 0x3fc   : > { %v1061_v5 = vpop.xlane.xlu2 %1060 }
 0x3fd   : > { %1735 = vrcp.f32 %v1061_v5 }
 0x3fe   : > { %1737 = vpow2.f32 %v984_v56 }
 0x3ff   : > { %v2631_v32 = vpop.eup %1729  ;;  %1739 = vpow2.f32 %v1010_v60 }
 0x400   : > { %v2634_v46 = vpop.eup %1731  ;;  %1741 = vpow2.f32 %v1012_v53 }
 0x401   : > { %v1107_v7 = vadd.f32 %v2634_v46, %v2631_v32  ;;  %v2641_v61 = vpop.eup %1733  ;;  %1743 = vpow2.f32 %v1018_v54 }
 0x402   : > { %1745 = vpow2.f32 %v1020_v45 }
 0x403   : > { %v1736_v42 = vpop.eup %1735  ;;  %1096 = vadd.xlane.f32.xlu1 %v1095_v55  ;;  %1108 = vadd.xlane.f32.xlu0 %v1107_v7 }
 0x404   : > { %v2646_v57 = vpop.eup %1737  ;;  %v827_v24 = vpop.xlane.xlu2 %826  ;;  %v2649_v13 = vmul.f32 %v1736_v42, %v2480_v31  ;;  %v2655_v56 = vmul.f32 %v1736_v42, %v2482_v34  ;;  %v866_v31 = vsub.f32 %v3012_v25, %v3011_v3 }
 0x405   : > { %v2657_v60 = vpop.eup %1739  ;;  %v892_v53 = vsub.f32 %v2426_v16, %v827_v24  ;;  %v893_v14 = vsub.f32 %v2428_v41, %v827_v24  ;;  %v1089_v34 = vadd.f32 %v2646_v57, %v2641_v61 }
 0x406   : > { %v2661_v36 = vpop.eup %1741 }
 0x407   : > { %v1014_v28 = vmul.f32 1.442695, %v892_v53  ;;  %v1016_v44 = vmul.f32 1.442695, %v893_v14  ;;  %v1110_v16 = vadd.f32 %v2661_v36, %v2657_v60  ;;  %v2672_v59 = vpop.eup %1743 }
 0x408   : > { %v2674_v15 = vpop.eup %1745 }
 0x409   : > { %1747 = vpow2.f32 %v1014_v28  ;;  %v1116_v54 = vadd.f32 %v2674_v15, %v2672_v59 }
 0x40a   : > { %1749 = vpow2.f32 %v1016_v44 }
 0x40b   : > { %1751 = vrcp.f32 %v2595_v33  ;;  %1090 = vadd.xlane.f32.xlu1 %v1089_v34  ;;  %1111 = vadd.xlane.f32.xlu0 %v1110_v16 }
 0x40c   : > { %v1067_v41 = vpop.xlane.xlu2 %1066 }
 0x40d   : > { %1753 = vrcp.f32 %v1067_v41 }
 0x40f   : > { %v2676_v55 = vpop.eup %1747 }
 0x410   : > { %v2678_v7 = vpop.eup %1749 }
 0x411   : > { %v1752_v42 = vpop.eup %1751  ;;  %v1113_v45 = vadd.f32 %v2678_v7, %v2676_v55 }
 0x412   : > { %v2685_v53 = vmul.f32 %v1752_v42, %v2430_v18  ;;  %v2691_v28 = vmul.f32 %v1752_v42, %v2432_v19  ;;  %v1070_v18 = vpop.xlane.xlu0 %1069 }
 0x413   : > { %v1754_v33 = vpop.eup %1753  ;;  %1117 = vadd.xlane.f32.xlu0 %v1116_v54  ;;  %1114 = vadd.xlane.f32.xlu2 %v1113_v45 }
 0x414   : > { %v833_v24 = vpop.xlane.xlu2 %832  ;;  %v2688_v14 = vmul.f32 %v1754_v33, %v2496_v39  ;;  %v2694_v44 = vmul.f32 %v1754_v33, %v2498_v17 }
 0x415   : > { %v896_v34 = vsub.f32 %v2502_v35, %v833_v24  ;;  %v897_v16 = vsub.f32 %v2504_v51, %v833_v24  ;;  %v313_v24 = vld [vmem:[%s2943_s4 + $0x18] sm:$0xff] }
 0x417   : > { %v1022_v54 = vmul.f32 1.442695, %v896_v34  ;;  %v1024_v45 = vmul.f32 1.442695, %v897_v16  ;;  %v872_v34 = vsub.f32 %v2276_v47, %v2525_v43  ;;  %v3007_v16 = vld [vmem:[#allocation22_spill] sm:$0xff]  ;;  %v3013_v47 = vld [vmem:[#allocation17_spill] sm:$0xff] }
 0x419   : > { %1755 = vpow2.f32 %v1022_v54  ;;  %v873_v54 = vsub.f32 %v3007_v16, %v2525_v43  ;;  %v867_v43 = vsub.f32 %v3013_v47, %v3011_v3  ;;  %v3016_v3 = vld [vmem:[#allocation19_spill] sm:$0xff] }
 0x41a   : > { %1757 = vpow2.f32 %v1024_v45  ;;  %v3008_v45 = vld [vmem:[#allocation38_spill] sm:$0xff] }
 0x41c   : > { %v318_v39 = vpop.permute.xlu2 %317 }
 0x41d   : > { %v373_v19 = vadd.f32 %v2108_v21, %v318_v39  ;;  %v396_v17 = vadd.f32 %v2110_v22, %v318_v39  ;;  %v311_v21 = vld [vmem:[%s2943_s4 + $0x8] sm:$0xff]  ;;  %v312_v22 = vld [vmem:[%s2943_s4 + $0x10] sm:$0xff] }
 0x41e   : > { %v3009_v39 = vld [vmem:[#allocation23_spill] sm:$0xff] }
 0x41f   : > { %v2704_v42 = vpop.eup %1755  ;;  %v409_v35 = vpack.c.bf16 %v396_v17, %v373_v19  ;;  %v874_v19 = vsub.f32 %v3009_v39, %v3008_v45  ;;  %v3010_v17 = vld [vmem:[#allocation24_spill] sm:$0xff]  ;;  %v962_v39 = vmul.f32 1.442695, %v866_v31 }
 0x420   : > { %v2706_v33 = vpop.eup %1757 }
 0x421   : > { %414 = vst [vmem:[#allocation2] sm:$0xff] %v409_v35  ;;  %v1119_v51 = vadd.f32 %v2706_v33, %v2704_v42  ;;  %v875_v35 = vsub.f32 %v3010_v17, %v3008_v45  ;;  %v964_v45 = vmul.f32 1.442695, %v867_v43  ;;  %v3019_v43 = vld [vmem:[#allocation21_spill] sm:$0xff] }
 0x423   : > { %1120 = vadd.xlane.f32.xlu2 %v1119_v51  ;;  %v974_v51 = vmul.f32 1.442695, %v872_v34  ;;  %v980_v6 = vmul.f32 1.442695, %v875_v35 }
 0x424   : > { %332 = vperm.xlu1 %1630, %v313_v24   ;;  %v976_v24 = vmul.f32 1.442695, %v873_v54  ;;  %v3014_v54 = vld [vmem:[#allocation39_spill] sm:$0xff] }
 0x425   : > { %1759 = vpow2.f32 %v974_v51 }
 0x426   : > { %1761 = vpow2.f32 %v976_v24  ;;  %v3017_v24 = vld [vmem:[#allocation36_spill] sm:$0xff] }
 0x427   : > { %322 = vperm.xlu0 %1628, %v311_v21   ;;  %v978_v21 = vmul.f32 1.442695, %v874_v19  ;;  %v3015_v19 = vld [vmem:[#allocation18_spill] sm:$0xff] }
 0x428   : > { %v868_v17 = vsub.f32 %v3015_v19, %v3014_v54  ;;  %v871_v19 = vsub.f32 %v3019_v43, %v3017_v24 }
 0x429   : > { %1763 = vpow2.f32 %v978_v21  ;;  %v3018_v21 = vld [vmem:[#allocation20_spill] sm:$0xff] }
 0x42a   : > { %1765 = vpow2.f32 %v980_v6  ;;  %v869_v6 = vsub.f32 %v3016_v3, %v3014_v54  ;;  %v966_v51 = vmul.f32 1.442695, %v868_v17  ;;  %v870_v47 = vsub.f32 %v3018_v21, %v3017_v24  ;;  %v3021_v24 = vld [vmem:[#allocation33_spill] sm:$0xff] }
 0x42b   : > { %1767 = vpow2.f32 %v962_v39  ;;  %v972_v54 = vmul.f32 1.442695, %v871_v19 }
 0x42c   : > { %1769 = vpow2.f32 %v964_v45  ;;  %v968_v5 = vmul.f32 1.442695, %v869_v6  ;;  %v970_v45 = vmul.f32 1.442695, %v870_v47  ;;  %v3022_v47 = vld [vmem:[#allocation34_spill] sm:$0xff] }
 0x42d   : > { %1771 = vpow2.f32 %v966_v51 }
 0x42e   : > { %1773 = vrcp.f32 %v1070_v18 }
 0x42f   : > { %1775 = vpow2.f32 %v968_v5 }
 0x43b   : > { %327 = vperm.xlu2 %1629, %v312_v22   ;;  %v2731_v22 = vpop.eup %1759 }
 0x43c   : > { %v2733_v16 = vpop.eup %1761 }
 0x43d   : > { %v2735_v34 = vpop.eup %1763  ;;  %v1083_v25 = vadd.f32 %v2733_v16, %v2731_v22 }
 0x43e   : > { %v2739_v35 = vpop.eup %1765 }
 0x43f   : > { %v1086_v31 = vadd.f32 %v2739_v35, %v2735_v34  ;;  %v2751_v41 = vpop.eup %1767 }
 0x440   : > { %v2753_v39 = vpop.eup %1769 }
 0x441   : > { %3020 = vst [vmem:[#allocation22_spill] sm:$0xff] %v2753_v39  ;;  %v2757_v3 = vpop.eup %1771 }
 0x442   : > { %v1774_v6 = vpop.eup %1773 }
 0x443   : > { %v1182_v21 = vmul.f32 %v1774_v6, %v3021_v24  ;;  %v1183_v18 = vmul.f32 %v1774_v6, %v3022_v47  ;;  %v3026_v47 = vpack.c.bf16 %v2655_v56, %v2652_v23  ;;  %v3031_v23 = vld [vmem:[#allocation37_spill] sm:$0xff] }
 0x44e   : > { %1084 = vadd.xlane.f32.xlu1 %v1083_v25  ;;  %v1074_v25 = vadd.f32 %v2753_v39, %v2751_v41  ;;  %v1028_v39 = vpop.xlane.xlu1 %1027 }
 0x451   : > { %1087 = vadd.xlane.f32.xlu0 %v1086_v31  ;;  %v2759_v31 = vpop.eup %1775 }
 0x455   : > { %v1073_v17 = vpop.xlane.xlu2 %1072 }
 0x456   : > { %1777 = vrcp.f32 %v1073_v17 }
 0x457   : > { %1779 = vpow2.f32 %v970_v45  ;;  %v1077_v45 = vadd.f32 %v2759_v31, %v2757_v3 }
 0x458   : > { %1781 = vpow2.f32 %v972_v54 }
 0x459   : > { %1075 = vadd.xlane.f32.xlu0 %v1074_v25 }
 0x45c   : > { %v1778_v51 = vpop.eup %1777 }
 0x45d   : > { %v1184_v5 = vmul.f32 %v1778_v51, %v2551_v58  ;;  %v1185_v43 = vmul.f32 %v1778_v51, %v2553_v52  ;;  %v2765_v19 = vpop.eup %1779  ;;  %v1037_v58 = vpop.xlane.xlu1 %1036  ;;  %v3023_v52 = vpack.c.bf16 %v2688_v14, %v2685_v53  ;;  %v3024_v51 = vpack.c.bf16 %v2694_v44, %v2691_v28 }
 0x45e   : > { %v2767_v17 = vpop.eup %1781  ;;  %v3027_v53 = vpack.c.bf16 %v2606_v29, %v2598_v37  ;;  %v3028_v28 = vpack.c.bf16 %v2609_v50, %v2601_v2  ;;  %1783 = vrcp.f32 %v1037_v58  ;;  %v2808_v29 = vpop.xlane.xlu2 %1105  ;;  %v3032_v50 = vpack.c.bf16 %v2537_v38, %v2534_v0 }
 0x45f   : > { %v1232_v54 = vpack.c.bf16 %v1184_v5, %v1182_v21  ;;  %v1233_v25 = vpack.c.bf16 %v1185_v43, %v1183_v18  ;;  %v1080_v6 = vadd.f32 %v2767_v17, %v2765_v19  ;;  %v3025_v21 = vpack.c.bf16 %v2649_v13, %v2644_v26  ;;  %v2787_v18 = vpop.xlane.xlu0 %1099  ;;  %v3036_v43 = vld [vmem:[#allocation30_spill] sm:$0xff] }
 0x460   : > { %v3029_v26 = vpack.c.bf16 %v2563_v30, %v2560_v63  ;;  %v3030_v13 = vpack.c.bf16 %v2569_v8, %v2566_v49  ;;  %1785 = vrcp.f32 %v3031_v23  ;;  %v3033_v63 = vld [vmem:[#allocation40_spill] sm:$0xff]  ;;  %v3034_v30 = vpack.c.bf16 %v2543_v48, %v2540_v40  ;;  %v3035_v49 = vld [vmem:[#allocation29_spill] sm:$0xff]  ;;  %v3039_v40 = vld [vmem:[#allocation31_spill] sm:$0xff] }
 0x461   : > { %1078 = vadd.xlane.f32.xlu0 %v1077_v45  ;;  %1270 = vmatpush.bf16.xpose.msra.mxu0 %v1232_v54  ;;  %1787 = vrcp.f32 %v3033_v63  ;;  %v3037_v54 = vld [vmem:[#allocation25_spill] sm:$0xff] }
 0x462   : > { %1289 = vmatpush.bf16.xpose.msra.mxu1 %v1233_v25  ;;  %1789 = vrcp.f32 %v1028_v39 }
 0x464   : > { %1081 = vadd.xlane.f32.xlu2 %v1080_v6  ;;  %v1784_v2 = vpop.eup %1783 }
 0x465   : > { %v1160_v8 = vmul.f32 %v1784_v2, %v3035_v49  ;;  %v1161_v45 = vmul.f32 %v1784_v2, %v3036_v43  ;;  %v3044_v49 = vld [vmem:[#allocation15_spill] sm:$0xff] }
 0x466   : > { %v2779_v24 = vpop.xlane.xlu1 %1102  ;;  %v1786_v5 = vpop.eup %1785 }
 0x467   : > { %v1158_v25 = vmul.f32 %v1786_v5, %v3037_v54 }
 0x469   : > { %1271 = vmatpush.bf16.xpose.msra.mxu0 %v3023_v52  ;;  %v3038_v52 = vld [vmem:[#allocation26_spill] sm:$0xff]  ;;  %v1220_v38 = vpack.c.bf16 %v1160_v8, %v1158_v25 }
 0x46a   : > { %1290 = vmatpush.bf16.xpose.msra.mxu1 %v3024_v51  ;;  %v1159_v0 = vmul.f32 %v1786_v5, %v3038_v52  ;;  %v1788_v51 = vpop.eup %1787  ;;  %v3045_v52 = vld [vmem:[#allocation10_spill] sm:$0xff] }
 0x46b   : > { %v1156_v48 = vmul.f32 %v1788_v51, %v3039_v40 }
 0x46e   : > { %v2792_v14 = vpop.xlane.xlu1 %1093 }
 0x471   : > { %1272 = vmatpush.bf16.xpose.msra.mxu0 %v3025_v21  ;;  %v1221_v21 = vpack.c.bf16 %v1161_v45, %v1159_v0 }
 0x472   : > { %1291 = vmatpush.bf16.xpose.msra.mxu1 %v3026_v47 }
 0x476   : > { %v2797_v44 = vpop.xlane.xlu0 %1108  ;;  %v2806_v37 = vpop.xlane.xlu1 %1096 }
 0x479   : > { %1273 = vmatpush.bf16.xpose.msra.mxu0 %v3027_v53  ;;  %v1790_v53 = vpop.eup %1789 }
 0x47a   : > { %1292 = vmatpush.bf16.xpose.msra.mxu1 %v3028_v28  ;;  %v3040_v28 = vld [vmem:[#allocation32_spill] sm:$0xff] }
 0x47b   : > { %v1157_v39 = vmul.f32 %v1788_v51, %v3040_v28 }
 0x47e   : > { %v1112_v56 = vpop.xlane.xlu0 %1111  ;;  %v2820_v6 = vpop.xlane.xlu1 %1090 }
 0x481   : > { %1274 = vmatpush.bf16.xpose.msra.mxu0 %v3029_v26  ;;  %v3041_v26 = vld [vmem:[#allocation27_spill] sm:$0xff] }
 0x482   : > { %1293 = vmatpush.bf16.xpose.msra.mxu1 %v3030_v13  ;;  %v1154_v13 = vmul.f32 %v1790_v53, %v3041_v26 }
 0x484   : > { %v1218_v43 = vpack.c.bf16 %v1156_v48, %v1154_v13  ;;  %v3047_v13 = vld [vmem:[#allocation12_spill] sm:$0xff] }
 0x486   : > { %v1115_v58 = vpop.xlane.xlu2 %1114  ;;  %v1118_v47 = vpop.xlane.xlu0 %1117 }
 0x487   : > { %1791 = vrcp.f32 %v1118_v47 }
 0x489   : > { %1275 = vmatpush.bf16.xpose.msra.mxu0 %v3032_v50  ;;  %v3042_v50 = vld [vmem:[#allocation28_spill] sm:$0xff] }
 0x48a   : > { %1294 = vmatpush.bf16.xpose.msra.mxu1 %v3034_v30  ;;  %v1155_v63 = vmul.f32 %v1790_v53, %v3042_v50  ;;  %v3043_v30 = vld [vmem:[#allocation14_spill] sm:$0xff] }
 0x48c   : > { %v1219_v45 = vpack.c.bf16 %v1157_v39, %v1155_v63 }
 0x491   : > { %1276 = vmatpush.bf16.xpose.msra.mxu0 %v1220_v38  ;;  %v3046_v38 = vld [vmem:[#allocation11_spill] sm:$0xff] }
 0x492   : > { %1295 = vmatpush.bf16.xpose.msra.mxu1 %v1221_v21  ;;  %v1792_v21 = vpop.eup %1791 }
 0x493   : > { %v1214_v40 = vmul.f32 %v1792_v21, %v2672_v59  ;;  %v1215_v28 = vmul.f32 %v1792_v21, %v2674_v15  ;;  %v1534_v59 = vld [vmem:[#allocation2] sm:$0xf] }
 0x496   : > { %v333_v23 = vpop.permute.xlu1 %332  ;;  %v1121_v2 = vpop.xlane.xlu2 %1120 }
 0x497   : > { %v380_v5 = vadd.f32 %v3043_v30, %v333_v23  ;;  %v403_v8 = vadd.f32 %v3044_v49, %v333_v23  ;;  %1793 = vrcp.f32 %v1121_v2  ;;  %v3048_v2 = vld [vmem:[#allocation13_spill] sm:$0xff] }
 0x498   : > { %1795 = vrcp.f32 %v1115_v58  ;;  %v1556_v49 = vld [vmem:[#allocation2 + $0x4] sm:$0xf] }
 0x499   : > { %v412_v54 = vpack.c.bf16 %v403_v8, %v380_v5  ;;  %v323_v25 = vpop.permute.xlu0 %322  ;;  %1277 = vmatpush.bf16.xpose.msra.mxu0 %v1218_v43  ;;  %1797 = vrcp.f32 %v1112_v56 }
 0x49a   : > { %v375_v0 = vadd.f32 %v3045_v52, %v323_v25  ;;  %v398_v51 = vadd.f32 %v3046_v38, %v323_v25  ;;  %1296 = vmatpush.bf16.xpose.msra.mxu1 %v1219_v45  ;;  %1799 = vrcp.f32 %v2797_v44 }
 0x49b   : > { %417 = vst [vmem:[#allocation2 + $0x18] sm:$0xff] %v412_v54  ;;  %1801 = vrcp.f32 %v2808_v29 }
 0x49c   : > { %v410_v47 = vpack.c.bf16 %v398_v51, %v375_v0  ;;  %1803 = vrcp.f32 %v2779_v24 }
 0x49d   : > { %v1794_v53 = vpop.eup %1793  ;;  %1805 = vrcp.f32 %v2787_v18 }
 0x49e   : > { %v1216_v48 = vmul.f32 %v1794_v53, %v2704_v42  ;;  %v1217_v39 = vmul.f32 %v1794_v53, %v2706_v33  ;;  %415 = vst [vmem:[#allocation2 + $0x8] sm:$0xff] %v410_v47  ;;  %v328_v26 = vpop.permute.xlu2 %327  ;;  %v1796_v30 = vpop.eup %1795  ;;  %1807 = vrcp.f32 %v2806_v37 }
 0x49f   : > { %v378_v23 = vadd.f32 %v3047_v13, %v328_v26  ;;  %v401_v50 = vadd.f32 %v3048_v2, %v328_v26  ;;  %v1798_v56 = vpop.eup %1797  ;;  %v1212_v15 = vmul.f32 %v1796_v30, %v2676_v55  ;;  %v1213_v42 = vmul.f32 %v1796_v30, %v2678_v7 }
 0x4a0   : > { %v1248_v63 = vpack.c.bf16 %v1216_v48, %v1214_v40  ;;  %v1249_v58 = vpack.c.bf16 %v1217_v39, %v1215_v28  ;;  %v1210_v54 = vmul.f32 %v1798_v56, %v2657_v60  ;;  %v1211_v25 = vmul.f32 %v1798_v56, %v2661_v36  ;;  %v1800_v7 = vpop.eup %1799  ;;  %v3049_v48 = vld [vmem:[#allocation41_spill] sm:$0xff] }
 0x4a1   : > { %v411_v5 = vpack.c.bf16 %v401_v50, %v378_v23  ;;  %v1802_v29 = vpop.eup %1801  ;;  %v1208_v52 = vmul.f32 %v1800_v7, %v2631_v32  ;;  %v1209_v0 = vmul.f32 %v1800_v7, %v2634_v46  ;;  %1809 = vrcp.f32 %v2792_v14 }
 0x4a2   : > { %1308 = vmatpush.bf16.xpose.msrb.mxu0 %v1248_v63  ;;  %1327 = vmatpush.bf16.xpose.msrb.mxu1 %v1249_v58  ;;  %v1246_v55 = vpack.c.bf16 %v1212_v15, %v1210_v54  ;;  %v1247_v44 = vpack.c.bf16 %v1213_v42, %v1211_v25  ;;  %v1206_v60 = vmul.f32 %v1802_v29, %v2557_v10  ;;  %v1804_v21 = vpop.eup %1803  ;;  %v1559_v18 = vld [vmem:[#allocation2 + $0x14] sm:$0xf0]  ;;  %v1544_v10 = vld [vmem:[#allocation2 + $0x18] sm:$0xf0]  ;;  %1811 = vrcp.f32 %v2820_v6 }
 0x4a3   : > { %416 = vst [vmem:[#allocation2 + $0x10] sm:$0xff] %v411_v5  ;;  %v1207_v36 = vmul.f32 %v1802_v29, %v2571_v4  ;;  %v1806_v47 = vpop.eup %1805  ;;  %v1204_v32 = vmul.f32 %v1804_v21, %v2585_v9  ;;  %v1205_v46 = vmul.f32 %v1804_v21, %v2589_v12  ;;  %v1824_v21 = vld [vmem:[%s2068_s8 + $0x10] sm:$0xff] }
 0x4a4   : > { %v1244_v38 = vpack.c.bf16 %v1208_v52, %v1206_v60  ;;  %v1202_v28 = vmul.f32 %v1806_v47, %v2519_v20  ;;  %v1203_v39 = vmul.f32 %v1806_v47, %v3049_v48  ;;  %v1808_v13 = vpop.eup %1807  ;;  %v3050_v52 = vld [vmem:[#allocation22_spill] sm:$0xff] }
 0x4a5   : > { %v1557_v33 = vld [vmem:[#allocation2 + $0x4] sm:$0xf0]  ;;  %v1536_v8 = vld [vmem:[#allocation2 + $0x8] sm:$0xf0]  ;;  %v1245_v51 = vpack.c.bf16 %v1209_v0, %v1207_v36  ;;  %v1200_v12 = vmul.f32 %v1808_v13, %v2627_v62  ;;  %v1201_v14 = vmul.f32 %v1808_v13, %v2629_v1 }
 0x4a6   : > { %v2841_v43 = vor.u32 %v1557_v33, %v1534_v59  ;;  %v2843_v45 = vor.u32 %v1556_v49, %v1536_v8  ;;  %v1242_v26 = vpack.c.bf16 %v1204_v32, %v1202_v28  ;;  %v1243_v37 = vpack.c.bf16 %v1205_v46, %v1203_v39  ;;  %v1823_v60 = vld [vmem:[%s2068_s8] sm:$0xff]  ;;  %v1826_v39 = vld [vmem:[%s2068_s8 + $0x30] sm:$0xff] }
 0x4a7   : > { %v1810_v9 = vpop.eup %1809 }
 0x4a8   : > { %1278 = vmatmul.bf16.vlgmr.msra.gmra.mxu0 %v2841_v43  ;;  %1297 = vmatmul.bf16.vlgmr.msra.gmra.mxu1 %v2843_v45  ;;  %v1198_v23 = vmul.f32 %v1810_v9, %v2611_v27  ;;  %v1199_v2 = vmul.f32 %v1810_v9, %v2615_v11  ;;  %v1812_v58 = vpop.eup %1811 }
 0x4a9   : > { %v1196_v62 = vmul.f32 %v1812_v58, %v2641_v61  ;;  %v1197_v27 = vmul.f32 %v1812_v58, %v2646_v57  ;;  %v1828_v58 = vld [vmem:[%s2068_s8 + $0x18] sm:$0xff] }
 0x4aa   : > { %1309 = vmatpush.bf16.xpose.msrb.mxu0 %v1246_v55  ;;  %1328 = vmatpush.bf16.xpose.msrb.mxu1 %v1247_v44  ;;  %v1542_v53 = vld [vmem:[#allocation2 + $0x10] sm:$0xf]  ;;  %v1558_v24 = vld [vmem:[#allocation2 + $0x14] sm:$0xf]  ;;  %v1240_v50 = vpack.c.bf16 %v1200_v12, %v1198_v23  ;;  %v1241_v20 = vpack.c.bf16 %v1201_v14, %v1199_v2 }
 0x4ab   : > { %v1543_v40 = vor.u32 %v1559_v18, %v1542_v53  ;;  %v1547_v4 = vor.u32 %v1558_v24, %v1544_v10  ;;  %v1825_v18 = vld [vmem:[%s2068_s8 + $0x20] sm:$0xff]  ;;  %v1827_v14 = vld [vmem:[%s2068_s8 + $0x8] sm:$0xff] }
 0x4b2   : > { %1310 = vmatpush.bf16.xpose.msrb.mxu0 %v1244_v38  ;;  %1329 = vmatpush.bf16.xpose.msrb.mxu1 %v1245_v51 }
 0x4b8   : > { %1283 = vmatmul.bf16.gmra.mxu0 %v1543_v40  ;;  %1302 = vmatmul.bf16.gmra.mxu1 %v1547_v4 }
 0x4ba   : > { %1311 = vmatpush.bf16.xpose.msrb.mxu0 %v1242_v26  ;;  %1330 = vmatpush.bf16.xpose.msrb.mxu1 %v1243_v37 }
 0x4c1   : > { %v1085_v15 = vpop.xlane.xlu1 %1084 }
 0x4c2   : > { %1312 = vmatpush.bf16.xpose.msrb.mxu0 %v1240_v50  ;;  %1331 = vmatpush.bf16.xpose.msrb.mxu1 %v1241_v20 }
 0x4c4   : > { %v1088_v63 = vpop.xlane.xlu0 %1087 }
 0x4c5   : > { %1813 = vrcp.f32 %v1088_v63 }
 0x4c6   : > { %1815 = vrcp.f32 %v1085_v15 }
 0x4cb   : > { %v1814_v30 = vpop.eup %1813 }
 0x4cc   : > { %v1194_v5 = vmul.f32 %v1814_v30, %v2735_v34  ;;  %v1195_v1 = vmul.f32 %v1814_v30, %v2739_v35  ;;  %v1076_v59 = vpop.xlane.xlu0 %1075  ;;  %v1816_v33 = vpop.eup %1815 }
 0x4cd   : > { %v1192_v34 = vmul.f32 %v1816_v33, %v2731_v22  ;;  %v1193_v35 = vmul.f32 %v1816_v33, %v2733_v16  ;;  %v1830_v33 = vld [vmem:[%s2068_s8 + $0x38] sm:$0xff] }
 0x4ce   : > { %v1238_v56 = vpack.c.bf16 %v1196_v62, %v1194_v5  ;;  %v1239_v11 = vpack.c.bf16 %v1197_v27, %v1195_v1 }
 0x4d0   : > { %1313 = vmatpush.bf16.xpose.msrb.mxu0 %v1238_v56  ;;  %1332 = vmatpush.bf16.xpose.msrb.mxu1 %v1239_v11  ;;  %v1829_v56 = vld [vmem:[%s2068_s8 + $0x28] sm:$0xff] }
 0x4d4   : > { %v1079_v42 = vpop.xlane.xlu0 %1078 }
 0x4d7   : > { %v1082_v6 = vpop.xlane.xlu2 %1081 }
 0x4d8   : > { %1817 = vrcp.f32 %v1082_v6 }
 0x4d9   : > { %1819 = vrcp.f32 %v1079_v42 }
 0x4da   : > { %1821 = vrcp.f32 %v1076_v59 }
 0x4de   : > { %v1818_v49 = vpop.eup %1817 }
 0x4df   : > { %v1190_v61 = vmul.f32 %v1818_v49, %v2765_v19  ;;  %v1191_v57 = vmul.f32 %v1818_v49, %v2767_v17  ;;  %v1820_v25 = vpop.eup %1819 }
 0x4e0   : > { %v1822_v55 = vpop.eup %1821  ;;  %v1188_v44 = vmul.f32 %v1820_v25, %v2757_v3  ;;  %v1189_v7 = vmul.f32 %v1820_v25, %v2759_v31  ;;  %v1347_v31 = vstv %s1346_s5 }
 0x4e1   : > { %v1236_v8 = vpack.c.bf16 %v1192_v34, %v1190_v61  ;;  %v1237_v54 = vpack.c.bf16 %v1193_v35, %v1191_v57  ;;  %v1186_v29 = vmul.f32 %v1822_v55, %v2751_v41  ;;  %v1187_v19 = vmul.f32 %v1822_v55, %v3050_v52 }
 0x4e3   : > { %1314 = vmatpush.bf16.xpose.msrb.mxu0 %v1236_v8  ;;  %1333 = vmatpush.bf16.xpose.msrb.mxu1 %v1237_v54  ;;  %v1234_v22 = vpack.c.bf16 %v1188_v44, %v1186_v29  ;;  %v1235_v17 = vpack.c.bf16 %v1189_v7, %v1187_v19 }
 0x4eb   : > { %1315 = vmatpush.bf16.xpose.msrb.mxu0 %v1234_v22  ;;  %1334 = vmatpush.bf16.xpose.msrb.mxu1 %v1235_v17 }
 0x4f2   : > { %1316 = vmatmul.bf16.vlgmr.msrb.gmra.mxu0 %v2841_v43  ;;  %1335 = vmatmul.bf16.vlgmr.msrb.gmra.mxu1 %v2843_v45 }
 0x502   : > { %1321 = vmatmul.bf16.gmra.mxu0 %v1543_v40  ;;  %1340 = vmatmul.bf16.gmra.mxu1 %v1547_v4 }
 0x525   : > { %v1279_v16 = vpop.f32.mrf.mxu0  ;;  %v1298_v3 = vpop.f32.mrf.mxu1 }
 0x526   : > { %v1299_v41 = vadd.f32 %v1298_v3, %v1279_v16 }
 0x528   : > { %v1348_v0 = vmul.f32 %v1347_v31, %v1299_v41 }
 0x52a   : > { %v1356_v36 = vadd.f32 %v1823_v60, %v1348_v0 }
 0x52c   : > { %1364 = vst [vmem:[%s2883_s29] sm:$0xff] %v1356_v36 }
 0x52d   : > { %v1281_v43 = vpop.f32.mrf.mxu0  ;;  %v1300_v45 = vpop.f32.mrf.mxu1 }
 0x52e   : > { %v1301_v38 = vadd.f32 %v1300_v45, %v1281_v43 }
 0x530   : > { %v1350_v51 = vmul.f32 %v1347_v31, %v1301_v38 }
 0x532   : > { %v1358_v47 = vadd.f32 %v1824_v21, %v1350_v51 }
 0x534   : > { %1366 = vst [vmem:[%s2883_s29 + $0x10] sm:$0xff] %v1358_v47 }
 0x535   : > { %v1284_v53 = vpop.f32.mrf.mxu0  ;;  %v1303_v24 = vpop.f32.mrf.mxu1 }
 0x536   : > { %v1304_v32 = vadd.f32 %v1303_v24, %v1284_v53 }
 0x538   : > { %v1352_v46 = vmul.f32 %v1347_v31, %v1304_v32 }
 0x53a   : > { %v1360_v10 = vadd.f32 %v1825_v18, %v1352_v46 }
 0x53c   : > { %1368 = vst [vmem:[%s2883_s29 + $0x20] sm:$0xff] %v1360_v10 }
 0x53d   : > { %v1286_v40 = vpop.f32.mrf.mxu0  ;;  %v1305_v4 = vpop.f32.mrf.mxu1 }
 0x53e   : > { %v1306_v28 = vadd.f32 %v1305_v4, %v1286_v40 }
 0x540   : > { %v1354_v48 = vmul.f32 %v1347_v31, %v1306_v28 }
 0x542   : > { %v1362_v26 = vadd.f32 %v1826_v39, %v1354_v48 }
 0x544   : > { %1370 = vst [vmem:[%s2883_s29 + $0x30] sm:$0xff] %v1362_v26 }
 0x56f   : > { %v1317_v37 = vpop.f32.mrf.mxu0  ;;  %v1336_v13 = vpop.f32.mrf.mxu1 }
 0x570   : > { %v1337_v9 = vadd.f32 %v1336_v13, %v1317_v37 }
 0x572   : > { %v1349_v12 = vmul.f32 %v1347_v31, %v1337_v9 }
 0x574   : > { %v1357_v23 = vadd.f32 %v1827_v14, %v1349_v12 }
 0x576   : > { %1365 = vst [vmem:[%s2883_s29 + $0x8] sm:$0xff] %v1357_v23 }
 0x577   : > { %v1319_v2 = vpop.f32.mrf.mxu0  ;;  %v1338_v50 = vpop.f32.mrf.mxu1 }
 0x578   : > { %v1339_v20 = vadd.f32 %v1338_v50, %v1319_v2 }
 0x57a   : > { %v1351_v63 = vmul.f32 %v1347_v31, %v1339_v20 }
 0x57c   : > { %v1359_v30 = vadd.f32 %v1828_v58, %v1351_v63 }
 0x57e   : > { %1367 = vst [vmem:[%s2883_s29 + $0x18] sm:$0xff] %v1359_v30 }
 0x57f   : > { %v1322_v5 = vpop.f32.mrf.mxu0  ;;  %v1341_v62 = vpop.f32.mrf.mxu1 }
 0x580   : > { %v1342_v1 = vadd.f32 %v1341_v62, %v1322_v5 }
 0x582   : > { %v1353_v27 = vmul.f32 %v1347_v31, %v1342_v1 }
 0x584   : > { %v1361_v11 = vadd.f32 %v1829_v56, %v1353_v27 }
 0x586   : > { %1369 = vst [vmem:[%s2883_s29 + $0x28] sm:$0xff] %v1361_v11 }
 0x587   : > { %v1324_v59 = vpop.f32.mrf.mxu0  ;;  %v1343_v15 = vpop.f32.mrf.mxu1 }
 0x588   : > { %v1344_v6 = vadd.f32 %v1343_v15, %v1324_v59 }
 0x58a   : > { %v1355_v42 = vmul.f32 %v1347_v31, %v1344_v6 }
 0x58c   : > { %v1363_v49 = vadd.f32 %v1830_v33, %v1355_v42 }
 0x58e   : > { %1371 = vst [vmem:[%s2883_s29 + $0x38] sm:$0xff] %v1363_v49 }
 0x58f   : > { %1888 = shalt.err (!%p1885_p13)
}
 0x590   : > { %s1948_s9 = smov 256   ;;  %s1949_s8 = smov 16  }
 0x591   : > { %1563 = dma.vmem_to_hbm [thread:$0]  (%p2039_p9), %s1388_s14, 1024, %s1390_s17, %s1373_s26, %s1948_s9, %s1948_s9, %s1949_s8  }
 0x592 PF: > { %s1404_s29 = sand.u32 1, %s1923_s23   ;;  %p1570_p0 = pnand %p1477_p12, %p2046_p11 }
 0x593   : > { %s1405_s7 = scalar_lea.sflag [#allocation6], %s1404_s29 }
 0x594   : > { %p1571_p1 = pneg %p1570_p0 }
 0x596   : > { %1918 = dma.done.wait (%p1571_p1), %s1405_s7, 1024  }
 0x597   : > { %1920 = vsyncadd (%p1571_p1), %s1405_s7, 4294966272  ;;  %s23_s28 = sadd.s32 1, %s1943_s28   ;;  %s3051_s23 = smov %s1927_s24 }
 0x598   : > { %p20_p2 = scmp.ge.s32.totalorder %s23_s28, 4   ;;  %s3052_s24 = smov %s1931_s25 }
 0x599   : > { %s3053_s25 = smov %s2044_s12  ;;  %s3054_s26 = smov %s1939_s27 }
 0x59a   : > { %s3055_s27 = smov %s3057_s30  ;;  %22 = sbr.rel (!%p20_p2) target bundleno = 8 (0x8), region = 93 }
 0x59f   :  { %1411 = vsyncpa [#allocation5], 1 }
 0x5a0   :  { %1413 = vsyncpa [#allocation5 + $0x1], 1 }
 0x5a1   :  { %1414 = vsyncpa [#allocation6], 1 }
 0x5a2   :  { %1416 = vsyncpa [#allocation6 + $0x1], 1 }

</bundles_post_ra>
